<compile_context>
chip_gen: v7x
topology: tpu7x:2x2x1
jax: 0.10.0
libtpu: 0.0.40
codegen_flags: <defaults>
</compile_context>

<pallas_src>
import functools

import jax
import jax.numpy as jnp
from jax import lax
from jax.experimental import pallas as pl
from jax.experimental.pallas import tpu as pltpu


# ----------------------------------------------------------------------------
# weight re-layout (wrapper-side, parameters only)
# ----------------------------------------------------------------------------
def _banded_conv_weights(w, b, H, W):
    """Conv3d weights (C_out, C_in, K, K, K) -> per-depth-tap banded matrices.

    Returns:
      wm  : (K, H*W*C_in, H*W*C_out)  wm[kd] implements the 2-D (kh, kw)
            cross-correlation for depth tap kd, INCLUDING H/W zero padding
            (out-of-range taps are simply zero entries).
      brow: (1, H*W*C_out)            bias broadcast over (h, w).
    Lane ordering on both sides is (h*W + w)*C + c.
    """
    C_out, C_in, K, _, _ = w.shape
    pad = (K - 1) // 2
    k = jnp.arange(K)
    # sel_h[kh, h_in, h_out] = 1 iff h_in == h_out + kh - pad   (same for W)
    sel_h = (jnp.arange(H)[None, :, None]
             == jnp.arange(H)[None, None, :] + k[:, None, None] - pad).astype(w.dtype)
    sel_w = (jnp.arange(W)[None, :, None]
             == jnp.arange(W)[None, None, :] + k[:, None, None] - pad).astype(w.dtype)
    # wm[kd, h_in, w_in, ci, h, w, co] = w[co, ci, kd, h_in-h+pad, w_in-w+pad] or 0
    wm = jnp.einsum('oidef,eah,fbw->dabihwo', w, sel_h, sel_w)
    wm = wm.reshape(K, H * W * C_in, H * W * C_out)
    brow = jnp.broadcast_to(b[None, :], (H * W, C_out)).reshape(1, H * W * C_out)
    return wm, brow


# ----------------------------------------------------------------------------
# fused kernel: conv1+relu -> conv2+relu -> conv3+relu -> global softmax
# ----------------------------------------------------------------------------
def _actor_fused_kernel(x_ref, w1_ref, b1_ref, w2_ref, b2_ref, w3_ref, b3_ref,
                        o_ref, p1_ref, p2_ref, p3_ref, *,
                        N, D, pads, row0, stride, total_rows):
    # merged LHS / accumulator rows per depth tap (rows n*stride + d are the
    # valid outputs for batch n, depth d; rows in between are junk, discarded)
    M = (N - 1) * stride + D

    # --- zero ONLY the pad rows of each staging slab (aligned 8-row stores) --
    def zero_pad_rows(p_ref):
        w = p_ref.shape[1]
        p_ref[0:row0, :] = jnp.zeros((row0, w), p_ref.dtype)            # head
        for n in range(N - 1):                                          # gaps
            a = row0 + n * stride + D
            b = row0 + (n + 1) * stride
            p_ref[a:b, :] = jnp.zeros((b - a, w), p_ref.dtype)
        a = row0 + (N - 1) * stride + D                                 # tail
        if a < total_rows:
            p_ref[a:total_rows, :] = jnp.zeros((total_rows - a, w), p_ref.dtype)

    zero_pad_rows(p1_ref)
    zero_pad_rows(p2_ref)
    zero_pad_rows(p3_ref)

    # --- stage the (already lane-flattened) input into aligned interiors -----
    for n in range(N):
        off = row0 + n * stride
        p1_ref[off:off + D, :] = x_ref[n]

    # --- one conv layer = K_d matmuls with ALL batch rows merged per matmul --
    def conv_merged(p_ref, w_ref, b_ref, pad):
        kd_taps = w_ref.shape[0]
        out_w = w_ref.shape[2]
        acc = jnp.broadcast_to(b_ref[...], (M, out_w))       # bias hoisted, f32
        base = row0 - pad
        for kd in range(kd_taps):                             # static unroll
            lhs = p_ref[base + kd:base + kd + M, :].astype(jnp.bfloat16)
            acc = acc + jnp.dot(lhs, w_ref[kd],
                                preferred_element_type=jnp.float32)
        return acc

    # conv1 (1->4, k=9) + ReLU -> layer-2 staging interiors (aligned stores)
    a1 = conv_merged(p1_ref, w1_ref, b1_ref, pads[0])
    for n in range(N):
        off = row0 + n * stride
        p2_ref[off:off + D, :] = jnp.maximum(a1[n * stride:n * stride + D, :], 0.0)

    # conv2 (4->2, k=7) + ReLU -> layer-3 staging interiors
    a2 = conv_merged(p2_ref, w2_ref, b2_ref, pads[1])
    for n in range(N):
        off = row0 + n * stride
        p3_ref[off:off + D, :] = jnp.maximum(a2[n * stride:n * stride + D, :], 0.0)

    # conv3 (2->1, k=3) + ReLU, kept in vregs for the fused global softmax
    a3 = conv_merged(p3_ref, w3_ref, b3_ref, pads[2])
    acts = [jnp.maximum(a3[n * stride:n * stride + D, :], 0.0) for n in range(N)]

    # global softmax over every element of the whole batch (x.view(-1).softmax(0))
    m = jnp.max(acts[0], keepdims=True)
    for a in acts[1:]:
        m = jnp.maximum(m, jnp.max(a, keepdims=True))
    e = [jnp.exp(a - m) for a in acts]
    s = jnp.sum(e[0], keepdims=True)
    for en in e[1:]:
        s = s + jnp.sum(en, keepdims=True)
    inv = pl.reciprocal(s, approx=True)                       # EUP slot
    # lane-dense (D, N*H*W) output -> a single unmasked full-tile store
    o_ref[...] = jnp.concatenate(e, axis=1) * inv


def _actor_pallas(x2, w1m, b1r, w2m, b2r, w3m, b3r, *,
                  N, D, H, W, pads, row0, stride, total_rows):
    HW = H * W
    widths = (w1m.shape[1], w2m.shape[1], w3m.shape[1])   # H*W*C_in per layer

    def full(shape):
        nd = len(shape)
        return pl.BlockSpec(shape, lambda i, _n=nd: (0,) * _n)

    kernel = functools.partial(
        _actor_fused_kernel, N=N, D=D, pads=tuple(pads),
        row0=row0, stride=stride, total_rows=total_rows)

    return pl.pallas_call(
        kernel,
        out_shape=jax.ShapeDtypeStruct((D, N * HW), jnp.float32),
        grid=(1,),
        in_specs=[full(x2.shape),
                  full(w1m.shape), full(b1r.shape),
                  full(w2m.shape), full(b2r.shape),
                  full(w3m.shape), full(b3r.shape)],
        out_specs=full((D, N * HW)),
        scratch_shapes=[pltpu.VMEM((total_rows, widths[0]), jnp.float32),
                        pltpu.VMEM((total_rows, widths[1]), jnp.float32),
                        pltpu.VMEM((total_rows, widths[2]), jnp.float32)],
        compiler_params=pltpu.CompilerParams(
            dimension_semantics=("arbitrary",),
            vmem_limit_bytes=32 * 1024 * 1024),   # explicit budget (v7x guard)
    )(x2, w1m, b1r, w2m, b2r, w3m, b3r)


@jax.jit
def actor_forward(obs_ncdhw, params):
    """obs_ncdhw: (N, 1, D, H, W) float32 — same layout as the PyTorch module."""
    N, C, D, H, W = obs_ncdhw.shape
    assert C == 1
    pads = tuple((params[k].shape[2] - 1) // 2 for k in ("w1", "w2", "w3"))
    max_pad = max(pads)

    # Shared, 8-sublane-aligned row layout for the depth-padded staging slabs:
    #   batch-n interior rows = [row0 + n*stride, row0 + n*stride + D)
    #   everything outside the interiors is zero (depth padding).
    row0 = max(8, -(-max_pad // 8) * 8)
    stride = -(-(D + max_pad) // 8) * 8
    total_rows = -(-(row0 + (N - 1) * stride + D + max_pad) // 8) * 8

    # layout plumbing only: activations as (row=(n,d), lane=(h,w,c)) slabs
    x2 = obs_ncdhw.reshape(N, D, H * W).astype(jnp.float32)
    w1m, b1r = _banded_conv_weights(params["w1"], params["b1"], H, W)
    w2m, b2r = _banded_conv_weights(params["w2"], params["b2"], H, W)
    w3m, b3r = _banded_conv_weights(params["w3"], params["b3"], H, W)
    # bf16 matmul operands (halves weight DMA + MXU weight-streaming rows);
    # biases stay f32 (they seed the f32 accumulator).
    # TODO(synk): at larger H*W the banded weights grow as K*(H*W)^2 — tile the
    # matmuls over H*W*C_out column blocks before this exceeds the VMEM budget.
    w1m, w2m, w3m = (w.astype(jnp.bfloat16) for w in (w1m, w2m, w3m))

    out = _actor_pallas(x2, w1m, b1r, w2m, b2r, w3m, b3r,
                        N=N, D=D, H=H, W=W, pads=pads,
                        row0=row0, stride=stride, total_rows=total_rows)
    # (D, N*H*W) -> (N, 1, D, H, W)
    return out.reshape(D, N, H, W).transpose(1, 0, 2, 3).reshape(N, 1, D, H, W)


# ----------------------------------------------------------------------------
# params + pure-JAX reference (for validation only)
# ----------------------------------------------------------------------------
def init_actor_params(key):
    """Deterministic init mirroring nn.Conv3d default shapes (uniform +-1/sqrt(fan_in))."""
    def conv_init(k, c_out, c_in, K):
        kw_, kb_ = jax.random.split(k)
        bound = 1.0 / jnp.sqrt(jnp.float32(c_in * K ** 3))
        w = jax.random.uniform(kw_, (c_out, c_in, K, K, K), jnp.float32, -bound, bound)
        b = jax.random.uniform(kb_, (c_out,), jnp.float32, -bound, bound)
        return w, b

    k1, k2, k3 = jax.random.split(key, 3)
    w1, b1 = conv_init(k1, 4, 1, 9)
    w2, b2 = conv_init(k2, 2, 4, 7)
    w3, b3 = conv_init(k3, 1, 2, 3)
    return dict(w1=w1, b1=b1, w2=w2, b2=b2, w3=w3, b3=b3)


@jax.jit
def _reference_forward(obs, params):
    x = obs
    for wn, bn in (("w1", "b1"), ("w2", "b2"), ("w3", "b3")):
        w, b = params[wn], params[bn]
        pad = (w.shape[2] - 1) // 2
        x = lax.conv_general_dilated(
            x, w, window_strides=(1, 1, 1), padding=[(pad, pad)] * 3,
            dimension_numbers=("NCDHW", "OIDHW", "NCDHW"))
        x = jnp.maximum(x + b.reshape(1, -1, 1, 1, 1), 0.0)
    sm = jax.nn.softmax(x.reshape(-1), axis=0)
    return sm.reshape(x.shape)


if __name__ == "__main__":
    key = jax.random.PRNGKey(0)
    k_obs, k_par = jax.random.split(key)

    # small shapes consistent with the module: (batch, channels=1, D, H, W)
    obs = jax.random.normal(k_obs, (2, 1, 8, 8, 8), jnp.float32)
    params = init_actor_params(k_par)

    out = jax.block_until_ready(actor_forward(obs, params))

    assert out.shape == obs.shape, out.shape
    assert bool(jnp.all(jnp.isfinite(out)))
    total = float(jnp.sum(out))
    # global softmax sums to 1 (tolerance covers pl.reciprocal(approx=True))
    assert abs(total - 1.0) < 5e-3, total

    # numerical validation vs pure-JAX/XLA f32 reference (kernel uses bf16
    # matmul operands with f32 accumulation)
    ref = jax.block_until_ready(_reference_forward(obs, params))
    if not bool(jnp.allclose(out, ref, rtol=2e-2, atol=5e-5)):
        max_err = float(jnp.max(jnp.abs(out - ref)))
        raise AssertionError(f"mismatch vs reference, max abs err {max_err}")

    print("KERNEL_OK")
</pallas_src>

<mosaic_0001>
module attributes {stable_mosaic.version = 11 : i64} {
  func.func @_actor_fused_kernel(%arg0: i32, %arg1: memref<2x8x64xf32, #tpu.memory_space<vmem>>, %arg2: memref<9x64x256xbf16, #tpu.memory_space<vmem>>, %arg3: memref<1x256xf32, #tpu.memory_space<vmem>>, %arg4: memref<7x256x128xbf16, #tpu.memory_space<vmem>>, %arg5: memref<1x128xf32, #tpu.memory_space<vmem>>, %arg6: memref<3x128x64xbf16, #tpu.memory_space<vmem>>, %arg7: memref<1x64xf32, #tpu.memory_space<vmem>>, %arg8: memref<8x128xf32, #tpu.memory_space<vmem>>, %arg9: memref<40x64xf32, #tpu.memory_space<vmem>>, %arg10: memref<40x256xf32, #tpu.memory_space<vmem>>, %arg11: memref<40x128xf32, #tpu.memory_space<vmem>>) attributes {dimension_semantics = [#tpu.dimension_semantics<arbitrary>], iteration_bounds = array<i64: 1>, scalar_prefetch = 0 : i64, scratch_operands = 3 : i64, tpu.core_type = #tpu.core_type<tc>, window_params = [{pipeline_mode = #tpu.pipeline_mode<synchronous>, transform_indices = @transform_0, window_bounds = array<i64: 2, 8, 64>}, {pipeline_mode = #tpu.pipeline_mode<synchronous>, transform_indices = @transform_1, window_bounds = array<i64: 9, 64, 256>}, {pipeline_mode = #tpu.pipeline_mode<synchronous>, transform_indices = @transform_2, window_bounds = array<i64: 1, 256>}, {pipeline_mode = #tpu.pipeline_mode<synchronous>, transform_indices = @transform_3, window_bounds = array<i64: 7, 256, 128>}, {pipeline_mode = #tpu.pipeline_mode<synchronous>, transform_indices = @transform_4, window_bounds = array<i64: 1, 128>}, {pipeline_mode = #tpu.pipeline_mode<synchronous>, transform_indices = @transform_5, window_bounds = array<i64: 3, 128, 64>}, {pipeline_mode = #tpu.pipeline_mode<synchronous>, transform_indices = @transform_6, window_bounds = array<i64: 1, 64>}, {pipeline_mode = #tpu.pipeline_mode<synchronous>, transform_indices = @transform_7, window_bounds = array<i64: 8, 128>}]} {
    %cst = arith.constant 0.000000e+00 : f32
    %0 = vector.broadcast %cst : f32 to vector<8x64xf32>
    %c0 = arith.constant 0 : index
    %c0_0 = arith.constant 0 : index
    %1 = vector.load %arg9[%c0, %c0_0] : memref<40x64xf32, #tpu.memory_space<vmem>>, vector<8x64xf32>
    tpu.vector_store %arg9[%c0, %c0_0], %0 {strides = array<i32>} : memref<40x64xf32, #tpu.memory_space<vmem>>, vector<8x64xf32>,
    %cst_1 = arith.constant 0.000000e+00 : f32
    %2 = vector.broadcast %cst_1 : f32 to vector<8x64xf32>
    %c16 = arith.constant 16 : index
    %c0_2 = arith.constant 0 : index
    %3 = vector.load %arg9[%c16, %c0_2] : memref<40x64xf32, #tpu.memory_space<vmem>>, vector<8x64xf32>
    tpu.vector_store %arg9[%c16, %c0_2], %2 {strides = array<i32>} : memref<40x64xf32, #tpu.memory_space<vmem>>, vector<8x64xf32>,
    %cst_3 = arith.constant 0.000000e+00 : f32
    %4 = vector.broadcast %cst_3 : f32 to vector<8x64xf32>
    %c32 = arith.constant 32 : index
    %c0_4 = arith.constant 0 : index
    %5 = vector.load %arg9[%c32, %c0_4] : memref<40x64xf32, #tpu.memory_space<vmem>>, vector<8x64xf32>
    tpu.vector_store %arg9[%c32, %c0_4], %4 {strides = array<i32>} : memref<40x64xf32, #tpu.memory_space<vmem>>, vector<8x64xf32>,
    %cst_5 = arith.constant 0.000000e+00 : f32
    %6 = vector.broadcast %cst_5 : f32 to vector<8x256xf32>
    %c0_6 = arith.constant 0 : index
    %c0_7 = arith.constant 0 : index
    %7 = vector.load %arg10[%c0_6, %c0_7] : memref<40x256xf32, #tpu.memory_space<vmem>>, vector<8x256xf32>
    tpu.vector_store %arg10[%c0_6, %c0_7], %6 {strides = array<i32>} : memref<40x256xf32, #tpu.memory_space<vmem>>, vector<8x256xf32>,
    %cst_8 = arith.constant 0.000000e+00 : f32
    %8 = vector.broadcast %cst_8 : f32 to vector<8x256xf32>
    %c16_9 = arith.constant 16 : index
    %c0_10 = arith.constant 0 : index
    %9 = vector.load %arg10[%c16_9, %c0_10] : memref<40x256xf32, #tpu.memory_space<vmem>>, vector<8x256xf32>
    tpu.vector_store %arg10[%c16_9, %c0_10], %8 {strides = array<i32>} : memref<40x256xf32, #tpu.memory_space<vmem>>, vector<8x256xf32>,
    %cst_11 = arith.constant 0.000000e+00 : f32
    %10 = vector.broadcast %cst_11 : f32 to vector<8x256xf32>
    %c32_12 = arith.constant 32 : index
    %c0_13 = arith.constant 0 : index
    %11 = vector.load %arg10[%c32_12, %c0_13] : memref<40x256xf32, #tpu.memory_space<vmem>>, vector<8x256xf32>
    tpu.vector_store %arg10[%c32_12, %c0_13], %10 {strides = array<i32>} : memref<40x256xf32, #tpu.memory_space<vmem>>, vector<8x256xf32>,
    %cst_14 = arith.constant 0.000000e+00 : f32
    %12 = vector.broadcast %cst_14 : f32 to vector<8x128xf32>
    %c0_15 = arith.constant 0 : index
    %c0_16 = arith.constant 0 : index
    %13 = vector.load %arg11[%c0_15, %c0_16] : memref<40x128xf32, #tpu.memory_space<vmem>>, vector<8x128xf32>
    tpu.vector_store %arg11[%c0_15, %c0_16], %12 {strides = array<i32>} : memref<40x128xf32, #tpu.memory_space<vmem>>, vector<8x128xf32>,
    %cst_17 = arith.constant 0.000000e+00 : f32
    %14 = vector.broadcast %cst_17 : f32 to vector<8x128xf32>
    %c16_18 = arith.constant 16 : index
    %c0_19 = arith.constant 0 : index
    %15 = vector.load %arg11[%c16_18, %c0_19] : memref<40x128xf32, #tpu.memory_space<vmem>>, vector<8x128xf32>
    tpu.vector_store %arg11[%c16_18, %c0_19], %14 {strides = array<i32>} : memref<40x128xf32, #tpu.memory_space<vmem>>, vector<8x128xf32>,
    %cst_20 = arith.constant 0.000000e+00 : f32
    %16 = vector.broadcast %cst_20 : f32 to vector<8x128xf32>
    %c32_21 = arith.constant 32 : index
    %c0_22 = arith.constant 0 : index
    %17 = vector.load %arg11[%c32_21, %c0_22] : memref<40x128xf32, #tpu.memory_space<vmem>>, vector<8x128xf32>
    tpu.vector_store %arg11[%c32_21, %c0_22], %16 {strides = array<i32>} : memref<40x128xf32, #tpu.memory_space<vmem>>, vector<8x128xf32>,
    %c0_23 = arith.constant 0 : index
    %c0_24 = arith.constant 0 : index
    %c0_25 = arith.constant 0 : index
    %18 = vector.load %arg1[%c0_23, %c0_24, %c0_25] : memref<2x8x64xf32, #tpu.memory_space<vmem>>, vector<1x8x64xf32>
    %19 = vector.shape_cast %18 : vector<1x8x64xf32> to vector<8x64xf32>
    %c8 = arith.constant 8 : index
    %c0_26 = arith.constant 0 : index
    %20 = vector.load %arg9[%c8, %c0_26] : memref<40x64xf32, #tpu.memory_space<vmem>>, vector<8x64xf32>
    tpu.vector_store %arg9[%c8, %c0_26], %19 {strides = array<i32>} : memref<40x64xf32, #tpu.memory_space<vmem>>, vector<8x64xf32>,
    %c1 = arith.constant 1 : index
    %c0_27 = arith.constant 0 : index
    %c0_28 = arith.constant 0 : index
    %21 = vector.load %arg1[%c1, %c0_27, %c0_28] : memref<2x8x64xf32, #tpu.memory_space<vmem>>, vector<1x8x64xf32>
    %22 = vector.shape_cast %21 : vector<1x8x64xf32> to vector<8x64xf32>
    %c24 = arith.constant 24 : index
    %c0_29 = arith.constant 0 : index
    %23 = vector.load %arg9[%c24, %c0_29] : memref<40x64xf32, #tpu.memory_space<vmem>>, vector<8x64xf32>
    tpu.vector_store %arg9[%c24, %c0_29], %22 {strides = array<i32>} : memref<40x64xf32, #tpu.memory_space<vmem>>, vector<8x64xf32>,
    %c0_30 = arith.constant 0 : index
    %c0_31 = arith.constant 0 : index
    %24 = vector.load %arg3[%c0_30, %c0_31] : memref<1x256xf32, #tpu.memory_space<vmem>>, vector<1x256xf32>
    %25 = vector.shape_cast %24 : vector<1x256xf32> to vector<1x256xf32>
    %26 = vector.broadcast %25 : vector<1x256xf32> to vector<24x256xf32>
    %c4 = arith.constant 4 : index
    %c0_32 = arith.constant 0 : index
    %27 = vector.load %arg9[%c4, %c0_32] : memref<40x64xf32, #tpu.memory_space<vmem>>, vector<24x64xf32>
    %28 = arith.truncf %27 : vector<24x64xf32> to vector<24x64xbf16>
    %c0_33 = arith.constant 0 : index
    %c0_34 = arith.constant 0 : index
    %c0_35 = arith.constant 0 : index
    %29 = vector.load %arg2[%c0_33, %c0_34, %c0_35] : memref<9x64x256xbf16, #tpu.memory_space<vmem>>, vector<1x64x256xbf16>
    %30 = vector.shape_cast %29 : vector<1x64x256xbf16> to vector<64x256xbf16>
    %cst_36 = arith.constant dense<0.000000e+00> : vector<24x256xf32>
    %31 = tpu.matmul %28, %30, %cst_36 {dimension_numbers = #tpu.dot_dimension_numbers<[1], [0], [0], [1], [0, 0, 1, 1], [], []>} : vector<24x64xbf16>, vector<64x256xbf16>, vector<24x256xf32> -> vector<24x256xf32>
    %32 = arith.addf %26, %31 : vector<24x256xf32>
    %c5 = arith.constant 5 : index
    %c0_37 = arith.constant 0 : index
    %33 = vector.load %arg9[%c5, %c0_37] : memref<40x64xf32, #tpu.memory_space<vmem>>, vector<24x64xf32>
    %34 = arith.truncf %33 : vector<24x64xf32> to vector<24x64xbf16>
    %c1_38 = arith.constant 1 : index
    %c0_39 = arith.constant 0 : index
    %c0_40 = arith.constant 0 : index
    %35 = vector.load %arg2[%c1_38, %c0_39, %c0_40] : memref<9x64x256xbf16, #tpu.memory_space<vmem>>, vector<1x64x256xbf16>
    %36 = vector.shape_cast %35 : vector<1x64x256xbf16> to vector<64x256xbf16>
    %cst_41 = arith.constant dense<0.000000e+00> : vector<24x256xf32>
    %37 = tpu.matmul %34, %36, %cst_41 {dimension_numbers = #tpu.dot_dimension_numbers<[1], [0], [0], [1], [0, 0, 1, 1], [], []>} : vector<24x64xbf16>, vector<64x256xbf16>, vector<24x256xf32> -> vector<24x256xf32>
    %38 = arith.addf %32, %37 : vector<24x256xf32>
    %c6 = arith.constant 6 : index
    %c0_42 = arith.constant 0 : index
    %39 = vector.load %arg9[%c6, %c0_42] : memref<40x64xf32, #tpu.memory_space<vmem>>, vector<24x64xf32>
    %40 = arith.truncf %39 : vector<24x64xf32> to vector<24x64xbf16>
    %c2 = arith.constant 2 : index
    %c0_43 = arith.constant 0 : index
    %c0_44 = arith.constant 0 : index
    %41 = vector.load %arg2[%c2, %c0_43, %c0_44] : memref<9x64x256xbf16, #tpu.memory_space<vmem>>, vector<1x64x256xbf16>
    %42 = vector.shape_cast %41 : vector<1x64x256xbf16> to vector<64x256xbf16>
    %cst_45 = arith.constant dense<0.000000e+00> : vector<24x256xf32>
    %43 = tpu.matmul %40, %42, %cst_45 {dimension_numbers = #tpu.dot_dimension_numbers<[1], [0], [0], [1], [0, 0, 1, 1], [], []>} : vector<24x64xbf16>, vector<64x256xbf16>, vector<24x256xf32> -> vector<24x256xf32>
    %44 = arith.addf %38, %43 : vector<24x256xf32>
    %c7 = arith.constant 7 : index
    %c0_46 = arith.constant 0 : index
    %45 = vector.load %arg9[%c7, %c0_46] : memref<40x64xf32, #tpu.memory_space<vmem>>, vector<24x64xf32>
    %46 = arith.truncf %45 : vector<24x64xf32> to vector<24x64xbf16>
    %c3 = arith.constant 3 : index
    %c0_47 = arith.constant 0 : index
    %c0_48 = arith.constant 0 : index
    %47 = vector.load %arg2[%c3, %c0_47, %c0_48] : memref<9x64x256xbf16, #tpu.memory_space<vmem>>, vector<1x64x256xbf16>
    %48 = vector.shape_cast %47 : vector<1x64x256xbf16> to vector<64x256xbf16>
    %cst_49 = arith.constant dense<0.000000e+00> : vector<24x256xf32>
    %49 = tpu.matmul %46, %48, %cst_49 {dimension_numbers = #tpu.dot_dimension_numbers<[1], [0], [0], [1], [0, 0, 1, 1], [], []>} : vector<24x64xbf16>, vector<64x256xbf16>, vector<24x256xf32> -> vector<24x256xf32>
    %50 = arith.addf %44, %49 : vector<24x256xf32>
    %c8_50 = arith.constant 8 : index
    %c0_51 = arith.constant 0 : index
    %51 = vector.load %arg9[%c8_50, %c0_51] : memref<40x64xf32, #tpu.memory_space<vmem>>, vector<24x64xf32>
    %52 = arith.truncf %51 : vector<24x64xf32> to vector<24x64xbf16>
    %c4_52 = arith.constant 4 : index
    %c0_53 = arith.constant 0 : index
    %c0_54 = arith.constant 0 : index
    %53 = vector.load %arg2[%c4_52, %c0_53, %c0_54] : memref<9x64x256xbf16, #tpu.memory_space<vmem>>, vector<1x64x256xbf16>
    %54 = vector.shape_cast %53 : vector<1x64x256xbf16> to vector<64x256xbf16>
    %cst_55 = arith.constant dense<0.000000e+00> : vector<24x256xf32>
    %55 = tpu.matmul %52, %54, %cst_55 {dimension_numbers = #tpu.dot_dimension_numbers<[1], [0], [0], [1], [0, 0, 1, 1], [], []>} : vector<24x64xbf16>, vector<64x256xbf16>, vector<24x256xf32> -> vector<24x256xf32>
    %56 = arith.addf %50, %55 : vector<24x256xf32>
    %c9 = arith.constant 9 : index
    %c0_56 = arith.constant 0 : index
    %57 = vector.load %arg9[%c9, %c0_56] : memref<40x64xf32, #tpu.memory_space<vmem>>, vector<24x64xf32>
    %58 = arith.truncf %57 : vector<24x64xf32> to vector<24x64xbf16>
    %c5_57 = arith.constant 5 : index
    %c0_58 = arith.constant 0 : index
    %c0_59 = arith.constant 0 : index
    %59 = vector.load %arg2[%c5_57, %c0_58, %c0_59] : memref<9x64x256xbf16, #tpu.memory_space<vmem>>, vector<1x64x256xbf16>
    %60 = vector.shape_cast %59 : vector<1x64x256xbf16> to vector<64x256xbf16>
    %cst_60 = arith.constant dense<0.000000e+00> : vector<24x256xf32>
    %61 = tpu.matmul %58, %60, %cst_60 {dimension_numbers = #tpu.dot_dimension_numbers<[1], [0], [0], [1], [0, 0, 1, 1], [], []>} : vector<24x64xbf16>, vector<64x256xbf16>, vector<24x256xf32> -> vector<24x256xf32>
    %62 = arith.addf %56, %61 : vector<24x256xf32>
    %c10 = arith.constant 10 : index
    %c0_61 = arith.constant 0 : index
    %63 = vector.load %arg9[%c10, %c0_61] : memref<40x64xf32, #tpu.memory_space<vmem>>, vector<24x64xf32>
    %64 = arith.truncf %63 : vector<24x64xf32> to vector<24x64xbf16>
    %c6_62 = arith.constant 6 : index
    %c0_63 = arith.constant 0 : index
    %c0_64 = arith.constant 0 : index
    %65 = vector.load %arg2[%c6_62, %c0_63, %c0_64] : memref<9x64x256xbf16, #tpu.memory_space<vmem>>, vector<1x64x256xbf16>
    %66 = vector.shape_cast %65 : vector<1x64x256xbf16> to vector<64x256xbf16>
    %cst_65 = arith.constant dense<0.000000e+00> : vector<24x256xf32>
    %67 = tpu.matmul %64, %66, %cst_65 {dimension_numbers = #tpu.dot_dimension_numbers<[1], [0], [0], [1], [0, 0, 1, 1], [], []>} : vector<24x64xbf16>, vector<64x256xbf16>, vector<24x256xf32> -> vector<24x256xf32>
    %68 = arith.addf %62, %67 : vector<24x256xf32>
    %c11 = arith.constant 11 : index
    %c0_66 = arith.constant 0 : index
    %69 = vector.load %arg9[%c11, %c0_66] : memref<40x64xf32, #tpu.memory_space<vmem>>, vector<24x64xf32>
    %70 = arith.truncf %69 : vector<24x64xf32> to vector<24x64xbf16>
    %c7_67 = arith.constant 7 : index
    %c0_68 = arith.constant 0 : index
    %c0_69 = arith.constant 0 : index
    %71 = vector.load %arg2[%c7_67, %c0_68, %c0_69] : memref<9x64x256xbf16, #tpu.memory_space<vmem>>, vector<1x64x256xbf16>
    %72 = vector.shape_cast %71 : vector<1x64x256xbf16> to vector<64x256xbf16>
    %cst_70 = arith.constant dense<0.000000e+00> : vector<24x256xf32>
    %73 = tpu.matmul %70, %72, %cst_70 {dimension_numbers = #tpu.dot_dimension_numbers<[1], [0], [0], [1], [0, 0, 1, 1], [], []>} : vector<24x64xbf16>, vector<64x256xbf16>, vector<24x256xf32> -> vector<24x256xf32>
    %74 = arith.addf %68, %73 : vector<24x256xf32>
    %c12 = arith.constant 12 : index
    %c0_71 = arith.constant 0 : index
    %75 = vector.load %arg9[%c12, %c0_71] : memref<40x64xf32, #tpu.memory_space<vmem>>, vector<24x64xf32>
    %76 = arith.truncf %75 : vector<24x64xf32> to vector<24x64xbf16>
    %c8_72 = arith.constant 8 : index
    %c0_73 = arith.constant 0 : index
    %c0_74 = arith.constant 0 : index
    %77 = vector.load %arg2[%c8_72, %c0_73, %c0_74] : memref<9x64x256xbf16, #tpu.memory_space<vmem>>, vector<1x64x256xbf16>
    %78 = vector.shape_cast %77 : vector<1x64x256xbf16> to vector<64x256xbf16>
    %cst_75 = arith.constant dense<0.000000e+00> : vector<24x256xf32>
    %79 = tpu.matmul %76, %78, %cst_75 {dimension_numbers = #tpu.dot_dimension_numbers<[1], [0], [0], [1], [0, 0, 1, 1], [], []>} : vector<24x64xbf16>, vector<64x256xbf16>, vector<24x256xf32> -> vector<24x256xf32>
    %80 = arith.addf %74, %79 : vector<24x256xf32>
    %81 = vector.extract_strided_slice %80 {offsets = [0, 0], sizes = [8, 256], strides = [1, 1]} : vector<24x256xf32> to vector<8x256xf32>
    %cst_76 = arith.constant 0.000000e+00 : f32
    %82 = vector.broadcast %cst_76 : f32 to vector<8x256xf32>
    %83 = arith.maximumf %81, %82 : vector<8x256xf32>
    %c8_77 = arith.constant 8 : index
    %c0_78 = arith.constant 0 : index
    %84 = vector.load %arg10[%c8_77, %c0_78] : memref<40x256xf32, #tpu.memory_space<vmem>>, vector<8x256xf32>
    tpu.vector_store %arg10[%c8_77, %c0_78], %83 {strides = array<i32>} : memref<40x256xf32, #tpu.memory_space<vmem>>, vector<8x256xf32>,
    %85 = vector.extract_strided_slice %80 {offsets = [16, 0], sizes = [8, 256], strides = [1, 1]} : vector<24x256xf32> to vector<8x256xf32>
    %cst_79 = arith.constant 0.000000e+00 : f32
    %86 = vector.broadcast %cst_79 : f32 to vector<8x256xf32>
    %87 = arith.maximumf %85, %86 : vector<8x256xf32>
    %c24_80 = arith.constant 24 : index
    %c0_81 = arith.constant 0 : index
    %88 = vector.load %arg10[%c24_80, %c0_81] : memref<40x256xf32, #tpu.memory_space<vmem>>, vector<8x256xf32>
    tpu.vector_store %arg10[%c24_80, %c0_81], %87 {strides = array<i32>} : memref<40x256xf32, #tpu.memory_space<vmem>>, vector<8x256xf32>,
    %c0_82 = arith.constant 0 : index
    %c0_83 = arith.constant 0 : index
    %89 = vector.load %arg5[%c0_82, %c0_83] : memref<1x128xf32, #tpu.memory_space<vmem>>, vector<1x128xf32>
    %90 = vector.shape_cast %89 : vector<1x128xf32> to vector<1x128xf32>
    %91 = vector.broadcast %90 : vector<1x128xf32> to vector<24x128xf32>
    %c5_84 = arith.constant 5 : index
    %c0_85 = arith.constant 0 : index
    %92 = vector.load %arg10[%c5_84, %c0_85] : memref<40x256xf32, #tpu.memory_space<vmem>>, vector<24x256xf32>
    %93 = arith.truncf %92 : vector<24x256xf32> to vector<24x256xbf16>
    %c0_86 = arith.constant 0 : index
    %c0_87 = arith.constant 0 : index
    %c0_88 = arith.constant 0 : index
    %94 = vector.load %arg4[%c0_86, %c0_87, %c0_88] : memref<7x256x128xbf16, #tpu.memory_space<vmem>>, vector<1x256x128xbf16>
    %95 = vector.shape_cast %94 : vector<1x256x128xbf16> to vector<256x128xbf16>
    %cst_89 = arith.constant dense<0.000000e+00> : vector<24x128xf32>
    %96 = tpu.matmul %93, %95, %cst_89 {dimension_numbers = #tpu.dot_dimension_numbers<[1], [0], [0], [1], [0, 0, 1, 1], [], []>} : vector<24x256xbf16>, vector<256x128xbf16>, vector<24x128xf32> -> vector<24x128xf32>
    %97 = arith.addf %91, %96 : vector<24x128xf32>
    %c6_90 = arith.constant 6 : index
    %c0_91 = arith.constant 0 : index
    %98 = vector.load %arg10[%c6_90, %c0_91] : memref<40x256xf32, #tpu.memory_space<vmem>>, vector<24x256xf32>
    %99 = arith.truncf %98 : vector<24x256xf32> to vector<24x256xbf16>
    %c1_92 = arith.constant 1 : index
    %c0_93 = arith.constant 0 : index
    %c0_94 = arith.constant 0 : index
    %100 = vector.load %arg4[%c1_92, %c0_93, %c0_94] : memref<7x256x128xbf16, #tpu.memory_space<vmem>>, vector<1x256x128xbf16>
    %101 = vector.shape_cast %100 : vector<1x256x128xbf16> to vector<256x128xbf16>
    %cst_95 = arith.constant dense<0.000000e+00> : vector<24x128xf32>
    %102 = tpu.matmul %99, %101, %cst_95 {dimension_numbers = #tpu.dot_dimension_numbers<[1], [0], [0], [1], [0, 0, 1, 1], [], []>} : vector<24x256xbf16>, vector<256x128xbf16>, vector<24x128xf32> -> vector<24x128xf32>
    %103 = arith.addf %97, %102 : vector<24x128xf32>
    %c7_96 = arith.constant 7 : index
    %c0_97 = arith.constant 0 : index
    %104 = vector.load %arg10[%c7_96, %c0_97] : memref<40x256xf32, #tpu.memory_space<vmem>>, vector<24x256xf32>
    %105 = arith.truncf %104 : vector<24x256xf32> to vector<24x256xbf16>
    %c2_98 = arith.constant 2 : index
    %c0_99 = arith.constant 0 : index
    %c0_100 = arith.constant 0 : index
    %106 = vector.load %arg4[%c2_98, %c0_99, %c0_100] : memref<7x256x128xbf16, #tpu.memory_space<vmem>>, vector<1x256x128xbf16>
    %107 = vector.shape_cast %106 : vector<1x256x128xbf16> to vector<256x128xbf16>
    %cst_101 = arith.constant dense<0.000000e+00> : vector<24x128xf32>
    %108 = tpu.matmul %105, %107, %cst_101 {dimension_numbers = #tpu.dot_dimension_numbers<[1], [0], [0], [1], [0, 0, 1, 1], [], []>} : vector<24x256xbf16>, vector<256x128xbf16>, vector<24x128xf32> -> vector<24x128xf32>
    %109 = arith.addf %103, %108 : vector<24x128xf32>
    %c8_102 = arith.constant 8 : index
    %c0_103 = arith.constant 0 : index
    %110 = vector.load %arg10[%c8_102, %c0_103] : memref<40x256xf32, #tpu.memory_space<vmem>>, vector<24x256xf32>
    %111 = arith.truncf %110 : vector<24x256xf32> to vector<24x256xbf16>
    %c3_104 = arith.constant 3 : index
    %c0_105 = arith.constant 0 : index
    %c0_106 = arith.constant 0 : index
    %112 = vector.load %arg4[%c3_104, %c0_105, %c0_106] : memref<7x256x128xbf16, #tpu.memory_space<vmem>>, vector<1x256x128xbf16>
    %113 = vector.shape_cast %112 : vector<1x256x128xbf16> to vector<256x128xbf16>
    %cst_107 = arith.constant dense<0.000000e+00> : vector<24x128xf32>
    %114 = tpu.matmul %111, %113, %cst_107 {dimension_numbers = #tpu.dot_dimension_numbers<[1], [0], [0], [1], [0, 0, 1, 1], [], []>} : vector<24x256xbf16>, vector<256x128xbf16>, vector<24x128xf32> -> vector<24x128xf32>
    %115 = arith.addf %109, %114 : vector<24x128xf32>
    %c9_108 = arith.constant 9 : index
    %c0_109 = arith.constant 0 : index
    %116 = vector.load %arg10[%c9_108, %c0_109] : memref<40x256xf32, #tpu.memory_space<vmem>>, vector<24x256xf32>
    %117 = arith.truncf %116 : vector<24x256xf32> to vector<24x256xbf16>
    %c4_110 = arith.constant 4 : index
    %c0_111 = arith.constant 0 : index
    %c0_112 = arith.constant 0 : index
    %118 = vector.load %arg4[%c4_110, %c0_111, %c0_112] : memref<7x256x128xbf16, #tpu.memory_space<vmem>>, vector<1x256x128xbf16>
    %119 = vector.shape_cast %118 : vector<1x256x128xbf16> to vector<256x128xbf16>
    %cst_113 = arith.constant dense<0.000000e+00> : vector<24x128xf32>
    %120 = tpu.matmul %117, %119, %cst_113 {dimension_numbers = #tpu.dot_dimension_numbers<[1], [0], [0], [1], [0, 0, 1, 1], [], []>} : vector<24x256xbf16>, vector<256x128xbf16>, vector<24x128xf32> -> vector<24x128xf32>
    %121 = arith.addf %115, %120 : vector<24x128xf32>
    %c10_114 = arith.constant 10 : index
    %c0_115 = arith.constant 0 : index
    %122 = vector.load %arg10[%c10_114, %c0_115] : memref<40x256xf32, #tpu.memory_space<vmem>>, vector<24x256xf32>
    %123 = arith.truncf %122 : vector<24x256xf32> to vector<24x256xbf16>
    %c5_116 = arith.constant 5 : index
    %c0_117 = arith.constant 0 : index
    %c0_118 = arith.constant 0 : index
    %124 = vector.load %arg4[%c5_116, %c0_117, %c0_118] : memref<7x256x128xbf16, #tpu.memory_space<vmem>>, vector<1x256x128xbf16>
    %125 = vector.shape_cast %124 : vector<1x256x128xbf16> to vector<256x128xbf16>
    %cst_119 = arith.constant dense<0.000000e+00> : vector<24x128xf32>
    %126 = tpu.matmul %123, %125, %cst_119 {dimension_numbers = #tpu.dot_dimension_numbers<[1], [0], [0], [1], [0, 0, 1, 1], [], []>} : vector<24x256xbf16>, vector<256x128xbf16>, vector<24x128xf32> -> vector<24x128xf32>
    %127 = arith.addf %121, %126 : vector<24x128xf32>
    %c11_120 = arith.constant 11 : index
    %c0_121 = arith.constant 0 : index
    %128 = vector.load %arg10[%c11_120, %c0_121] : memref<40x256xf32, #tpu.memory_space<vmem>>, vector<24x256xf32>
    %129 = arith.truncf %128 : vector<24x256xf32> to vector<24x256xbf16>
    %c6_122 = arith.constant 6 : index
    %c0_123 = arith.constant 0 : index
    %c0_124 = arith.constant 0 : index
    %130 = vector.load %arg4[%c6_122, %c0_123, %c0_124] : memref<7x256x128xbf16, #tpu.memory_space<vmem>>, vector<1x256x128xbf16>
    %131 = vector.shape_cast %130 : vector<1x256x128xbf16> to vector<256x128xbf16>
    %cst_125 = arith.constant dense<0.000000e+00> : vector<24x128xf32>
    %132 = tpu.matmul %129, %131, %cst_125 {dimension_numbers = #tpu.dot_dimension_numbers<[1], [0], [0], [1], [0, 0, 1, 1], [], []>} : vector<24x256xbf16>, vector<256x128xbf16>, vector<24x128xf32> -> vector<24x128xf32>
    %133 = arith.addf %127, %132 : vector<24x128xf32>
    %134 = vector.extract_strided_slice %133 {offsets = [0, 0], sizes = [8, 128], strides = [1, 1]} : vector<24x128xf32> to vector<8x128xf32>
    %cst_126 = arith.constant 0.000000e+00 : f32
    %135 = vector.broadcast %cst_126 : f32 to vector<8x128xf32>
    %136 = arith.maximumf %134, %135 : vector<8x128xf32>
    %c8_127 = arith.constant 8 : index
    %c0_128 = arith.constant 0 : index
    %137 = vector.load %arg11[%c8_127, %c0_128] : memref<40x128xf32, #tpu.memory_space<vmem>>, vector<8x128xf32>
    tpu.vector_store %arg11[%c8_127, %c0_128], %136 {strides = array<i32>} : memref<40x128xf32, #tpu.memory_space<vmem>>, vector<8x128xf32>,
    %138 = vector.extract_strided_slice %133 {offsets = [16, 0], sizes = [8, 128], strides = [1, 1]} : vector<24x128xf32> to vector<8x128xf32>
    %cst_129 = arith.constant 0.000000e+00 : f32
    %139 = vector.broadcast %cst_129 : f32 to vector<8x128xf32>
    %140 = arith.maximumf %138, %139 : vector<8x128xf32>
    %c24_130 = arith.constant 24 : index
    %c0_131 = arith.constant 0 : index
    %141 = vector.load %arg11[%c24_130, %c0_131] : memref<40x128xf32, #tpu.memory_space<vmem>>, vector<8x128xf32>
    tpu.vector_store %arg11[%c24_130, %c0_131], %140 {strides = array<i32>} : memref<40x128xf32, #tpu.memory_space<vmem>>, vector<8x128xf32>,
    %c0_132 = arith.constant 0 : index
    %c0_133 = arith.constant 0 : index
    %142 = vector.load %arg7[%c0_132, %c0_133] : memref<1x64xf32, #tpu.memory_space<vmem>>, vector<1x64xf32>
    %143 = vector.shape_cast %142 : vector<1x64xf32> to vector<1x64xf32>
    %144 = vector.broadcast %143 : vector<1x64xf32> to vector<24x64xf32>
    %c7_134 = arith.constant 7 : index
    %c0_135 = arith.constant 0 : index
    %145 = vector.load %arg11[%c7_134, %c0_135] : memref<40x128xf32, #tpu.memory_space<vmem>>, vector<24x128xf32>
    %146 = arith.truncf %145 : vector<24x128xf32> to vector<24x128xbf16>
    %c0_136 = arith.constant 0 : index
    %c0_137 = arith.constant 0 : index
    %c0_138 = arith.constant 0 : index
    %147 = vector.load %arg6[%c0_136, %c0_137, %c0_138] : memref<3x128x64xbf16, #tpu.memory_space<vmem>>, vector<1x128x64xbf16>
    %148 = vector.shape_cast %147 : vector<1x128x64xbf16> to vector<128x64xbf16>
    %cst_139 = arith.constant dense<0.000000e+00> : vector<24x64xf32>
    %149 = tpu.matmul %146, %148, %cst_139 {dimension_numbers = #tpu.dot_dimension_numbers<[1], [0], [0], [1], [0, 0, 1, 1], [], []>} : vector<24x128xbf16>, vector<128x64xbf16>, vector<24x64xf32> -> vector<24x64xf32>
    %150 = arith.addf %144, %149 : vector<24x64xf32>
    %c8_140 = arith.constant 8 : index
    %c0_141 = arith.constant 0 : index
    %151 = vector.load %arg11[%c8_140, %c0_141] : memref<40x128xf32, #tpu.memory_space<vmem>>, vector<24x128xf32>
    %152 = arith.truncf %151 : vector<24x128xf32> to vector<24x128xbf16>
    %c1_142 = arith.constant 1 : index
    %c0_143 = arith.constant 0 : index
    %c0_144 = arith.constant 0 : index
    %153 = vector.load %arg6[%c1_142, %c0_143, %c0_144] : memref<3x128x64xbf16, #tpu.memory_space<vmem>>, vector<1x128x64xbf16>
    %154 = vector.shape_cast %153 : vector<1x128x64xbf16> to vector<128x64xbf16>
    %cst_145 = arith.constant dense<0.000000e+00> : vector<24x64xf32>
    %155 = tpu.matmul %152, %154, %cst_145 {dimension_numbers = #tpu.dot_dimension_numbers<[1], [0], [0], [1], [0, 0, 1, 1], [], []>} : vector<24x128xbf16>, vector<128x64xbf16>, vector<24x64xf32> -> vector<24x64xf32>
    %156 = arith.addf %150, %155 : vector<24x64xf32>
    %c9_146 = arith.constant 9 : index
    %c0_147 = arith.constant 0 : index
    %157 = vector.load %arg11[%c9_146, %c0_147] : memref<40x128xf32, #tpu.memory_space<vmem>>, vector<24x128xf32>
    %158 = arith.truncf %157 : vector<24x128xf32> to vector<24x128xbf16>
    %c2_148 = arith.constant 2 : index
    %c0_149 = arith.constant 0 : index
    %c0_150 = arith.constant 0 : index
    %159 = vector.load %arg6[%c2_148, %c0_149, %c0_150] : memref<3x128x64xbf16, #tpu.memory_space<vmem>>, vector<1x128x64xbf16>
    %160 = vector.shape_cast %159 : vector<1x128x64xbf16> to vector<128x64xbf16>
    %cst_151 = arith.constant dense<0.000000e+00> : vector<24x64xf32>
    %161 = tpu.matmul %158, %160, %cst_151 {dimension_numbers = #tpu.dot_dimension_numbers<[1], [0], [0], [1], [0, 0, 1, 1], [], []>} : vector<24x128xbf16>, vector<128x64xbf16>, vector<24x64xf32> -> vector<24x64xf32>
    %162 = arith.addf %156, %161 : vector<24x64xf32>
    %163 = vector.extract_strided_slice %162 {offsets = [0, 0], sizes = [8, 64], strides = [1, 1]} : vector<24x64xf32> to vector<8x64xf32>
    %cst_152 = arith.constant 0.000000e+00 : f32
    %164 = vector.broadcast %cst_152 : f32 to vector<8x64xf32>
    %165 = arith.maximumf %163, %164 : vector<8x64xf32>
    %166 = vector.extract_strided_slice %162 {offsets = [16, 0], sizes = [8, 64], strides = [1, 1]} : vector<24x64xf32> to vector<8x64xf32>
    %cst_153 = arith.constant 0.000000e+00 : f32
    %167 = vector.broadcast %cst_153 : f32 to vector<8x64xf32>
    %168 = arith.maximumf %166, %167 : vector<8x64xf32>
    %169 = vector.shape_cast %165 : vector<8x64xf32> to vector<1x8x64xf32>
    %cst_154 = arith.constant dense<0xFF800000> : vector<1xf32>
    %170 = vector.multi_reduction <maximumf>, %169, %cst_154 [1, 2] : vector<1x8x64xf32> to vector<1xf32>
    %171 = vector.shape_cast %170 : vector<1xf32> to vector<1x1x1xf32>
    %172 = vector.extract %171[0, 0, 0] : f32 from vector<1x1x1xf32>
    %173 = vector.broadcast %172 : f32 to vector<1x1xf32>
    %174 = vector.shape_cast %168 : vector<8x64xf32> to vector<1x8x64xf32>
    %cst_155 = arith.constant dense<0xFF800000> : vector<1xf32>
    %175 = vector.multi_reduction <maximumf>, %174, %cst_155 [1, 2] : vector<1x8x64xf32> to vector<1xf32>
    %176 = vector.shape_cast %175 : vector<1xf32> to vector<1x1x1xf32>
    %177 = vector.extract %176[0, 0, 0] : f32 from vector<1x1x1xf32>
    %178 = vector.broadcast %177 : f32 to vector<1x1xf32>
    %179 = arith.maximumf %173, %178 : vector<1x1xf32>
    %180 = vector.broadcast %179 : vector<1x1xf32> to vector<8x64xf32>
    %181 = arith.subf %165, %180 : vector<8x64xf32>
    %182 = math.exp %181 : vector<8x64xf32>
    %183 = vector.broadcast %179 : vector<1x1xf32> to vector<8x64xf32>
    %184 = arith.subf %168, %183 : vector<8x64xf32>
    %185 = math.exp %184 : vector<8x64xf32>
    %186 = vector.shape_cast %182 : vector<8x64xf32> to vector<1x8x64xf32>
    %cst_156 = arith.constant dense<0.000000e+00> : vector<1xf32>
    %187 = vector.multi_reduction <add>, %186, %cst_156 [1, 2] : vector<1x8x64xf32> to vector<1xf32>
    %188 = vector.shape_cast %187 : vector<1xf32> to vector<1x1x1xf32>
    %189 = vector.extract %188[0, 0, 0] : f32 from vector<1x1x1xf32>
    %190 = vector.broadcast %189 : f32 to vector<1x1xf32>
    %191 = vector.shape_cast %185 : vector<8x64xf32> to vector<1x8x64xf32>
    %cst_157 = arith.constant dense<0.000000e+00> : vector<1xf32>
    %192 = vector.multi_reduction <add>, %191, %cst_157 [1, 2] : vector<1x8x64xf32> to vector<1xf32>
    %193 = vector.shape_cast %192 : vector<1xf32> to vector<1x1x1xf32>
    %194 = vector.extract %193[0, 0, 0] : f32 from vector<1x1x1xf32>
    %195 = vector.broadcast %194 : f32 to vector<1x1xf32>
    %196 = arith.addf %190, %195 : vector<1x1xf32>
    %197 = tpu.reciprocal %196 {approx = true} : vector<1x1xf32> -> vector<1x1xf32>
    %198 = tpu.concatenate %182, %185 in 1 : vector<8x64xf32>, vector<8x64xf32> -> vector<8x128xf32>
    %199 = vector.broadcast %197 : vector<1x1xf32> to vector<8x128xf32>
    %200 = arith.mulf %198, %199 : vector<8x128xf32>
    %c0_158 = arith.constant 0 : index
    %c0_159 = arith.constant 0 : index
    %201 = vector.load %arg8[%c0_158, %c0_159] : memref<8x128xf32, #tpu.memory_space<vmem>>, vector<8x128xf32>
    tpu.vector_store %arg8[%c0_158, %c0_159], %200 {strides = array<i32>} : memref<8x128xf32, #tpu.memory_space<vmem>>, vector<8x128xf32>,
    return
  }
  func.func @transform_0(%arg0: i32) -> (i32, i32, i32) {
    %c0_i32 = arith.constant 0 : i32
    %c0_i32_0 = arith.constant 0 : i32
    %c0_i32_1 = arith.constant 0 : i32
    %c0_i32_2 = arith.constant 0 : i32
    return %c0_i32, %c0_i32_0, %c0_i32_1 : i32, i32, i32
  }
  func.func @transform_1(%arg0: i32) -> (i32, i32, i32) {
    %c0_i32 = arith.constant 0 : i32
    %c0_i32_0 = arith.constant 0 : i32
    %c0_i32_1 = arith.constant 0 : i32
    %c0_i32_2 = arith.constant 0 : i32
    return %c0_i32, %c0_i32_0, %c0_i32_1 : i32, i32, i32
  }
  func.func @transform_2(%arg0: i32) -> (i32, i32) {
    %c0_i32 = arith.constant 0 : i32
    %c0_i32_0 = arith.constant 0 : i32
    %c0_i32_1 = arith.constant 0 : i32
    return %c0_i32, %c0_i32_0 : i32, i32
  }
  func.func @transform_3(%arg0: i32) -> (i32, i32, i32) {
    %c0_i32 = arith.constant 0 : i32
    %c0_i32_0 = arith.constant 0 : i32
    %c0_i32_1 = arith.constant 0 : i32
    %c0_i32_2 = arith.constant 0 : i32
    return %c0_i32, %c0_i32_0, %c0_i32_1 : i32, i32, i32
  }
  func.func @transform_4(%arg0: i32) -> (i32, i32) {
    %c0_i32 = arith.constant 0 : i32
    %c0_i32_0 = arith.constant 0 : i32
    %c0_i32_1 = arith.constant 0 : i32
    return %c0_i32, %c0_i32_0 : i32, i32
  }
  func.func @transform_5(%arg0: i32) -> (i32, i32, i32) {
    %c0_i32 = arith.constant 0 : i32
    %c0_i32_0 = arith.constant 0 : i32
    %c0_i32_1 = arith.constant 0 : i32
    %c0_i32_2 = arith.constant 0 : i32
    return %c0_i32, %c0_i32_0, %c0_i32_1 : i32, i32, i32
  }
  func.func @transform_6(%arg0: i32) -> (i32, i32) {
    %c0_i32 = arith.constant 0 : i32
    %c0_i32_0 = arith.constant 0 : i32
    %c0_i32_1 = arith.constant 0 : i32
    return %c0_i32, %c0_i32_0 : i32, i32
  }
  func.func @transform_7(%arg0: i32) -> (i32, i32) {
    %c0_i32 = arith.constant 0 : i32
    %c0_i32_0 = arith.constant 0 : i32
    %c0_i32_1 = arith.constant 0 : i32
    return %c0_i32, %c0_i32_0 : i32, i32
  }
}

</mosaic_0001>

<bundles_post_ra>
// kernel: actor_forward.1
= control target key start
LH: loop header
LB: loop body
LE: loop exit
PB: predicated region body
PF: predicated region fallthrough
CT: control target
= control target key end

     0   :  { %vm27_vm0 = vcmask 523264   ;;  %v4154_v1 = vmov 0   ;;  %v4155_v2 = vmov 0.0   ;;  %vm1132_vm1 = vsmask.f32 5376  ;;  %s4156_s18 = smov 64   ;;  %s4957_s1 = inlined_call_operand.vmem [shape: bf16[9,64,256], index: 1, kind: input, shape index: {}]   ;;  %s4958_s0 = inlined_call_operand.vmem [shape: f32[2,8,64], index: 0, kind: input, shape index: {}]   ;;  %s4959_s3 = inlined_call_operand.vmem [shape: bf16[7,256,128], index: 3, kind: input, shape index: {}]   ;;  %s4960_s2 = inlined_call_operand.vmem [shape: f32[1,256], index: 2, kind: input, shape index: {}]   ;;  %s4961_s4 = inlined_call_operand.vmem [shape: f32[1,128], index: 4, kind: input, shape index: {}]   ;;  %s4962_s5 = inlined_call_operand.vmem [shape: bf16[3,128,64], index: 5, kind: input, shape index: {}]   ;;  %s4963_s6 = inlined_call_operand.vmem [shape: f32[1,64], index: 6, kind: input, shape index: {}]   ;;  %s4964_s7 = inlined_call_operand.vmem [shape: f32[8,128], index: 7, kind: output, shape index: {}]  }
   0x1   :  { %v3902_v0 = vld [vmem:[%s4957_s1 + $0x4] ss:$8 sps:$4 sm:$0xff]   ;;  %148 = vmatprep.mubr.bf16.mxu0 %v4154_v1  ;;  %28 = vst.msk [vmem:[#allocation2] sm:$0xff] %vm27_vm0, %v4155_v2  ;;  %29 = vst.msk [vmem:[#allocation2 + $0x10] sm:$0xff] %vm27_vm0, %v4155_v2  ;;  %v3904_v3 = vld [vmem:[%s4957_s1] ss:$8 sps:$4 sm:$0xff]  }
   0x2   :  { %30 = vst.msk [vmem:[#allocation2 + $0x20] sm:$0xff] %vm27_vm0, %v4155_v2  ;;  %31 = vst [vmem:[#allocation3] sm:$0xff] %v4155_v2  ;;  %116 = vmatprep.subr.bf16.mxu0 %v3902_v0  ;;  %v3905_v4 = vld [vmem:[%s4957_s1 + $0x14] ss:$8 sps:$4 sm:$0xff]   ;;  %v3907_v5 = vld [vmem:[%s4957_s1 + $0x10] ss:$8 sps:$4 sm:$0xff]  }
   0x3   :  { %32 = vst [vmem:[#allocation3 + $0x8] sm:$0xff] %v4155_v2  ;;  %35 = vst [vmem:[#allocation3 + $0x40] sm:$0xff] %v4155_v2  ;;  %117 = vmatpush1.bf16.msra.mxu0 %v3904_v3  ;;  %v3908_v6 = vld [vmem:[%s4957_s1 + $0x24] ss:$8 sps:$4 sm:$0xff]   ;;  %v3910_v8 = vld [vmem:[%s4957_s1 + $0x20] ss:$8 sps:$4 sm:$0xff]  }
   0x4   :  { %36 = vst [vmem:[#allocation3 + $0x48] sm:$0xff] %v4155_v2  ;;  %37 = vst [vmem:[#allocation4] sm:$0xff] %v4155_v2  ;;  %118 = vmatprep.subr.bf16.mxu0 %v3905_v4  ;;  %v40_v7 = vld [vmem:[%s4958_s0] sm:$0xff]  ;;  %v3911_v9 = vld [vmem:[%s4957_s1 + $0x34] ss:$8 sps:$4 sm:$0xff]   ;;  %vm1361_vm2 = vcmask 1044480  }
   0x5   :  { %38 = vst [vmem:[#allocation4 + $0x10] sm:$0xff] %v4155_v2  ;;  %39 = vst [vmem:[#allocation4 + $0x20] sm:$0xff] %v4155_v2  ;;  %v3010_v10 = vld [vmem:[%s4958_s0 + $0x8] sm:$0xff]  ;;  %v3913_v11 = vld [vmem:[%s4957_s1 + $0x30] ss:$8 sps:$4 sm:$0xff]   ;;  %vm2196_vm5 = vcmask 1046528  }
   0x6   :  { %41 = vst.msk [vmem:[#allocation2 + $0x8] sm:$0xff] %vm27_vm0, %v40_v7  ;;  %44 = vst.msk [vmem:[#allocation2 + $0x18] sm:$0xff] %vm27_vm0, %v3010_v10  ;;  %v3916_v12 = vld [vmem:[%s4957_s1 + $0x44] ss:$8 sps:$4 sm:$0xff]   ;;  %v3914_v16 = vld [vmem:[%s4957_s1 + $0x40] ss:$8 sps:$4 sm:$0xff]  }
   0x7   :  { %119 = vmatpush1.bf16.msra.mxu0 %v3907_v5  ;;  %v3919_v17 = vld [vmem:[%s4957_s1 + $0x54] ss:$8 sps:$4 sm:$0xff]   ;;  %v3917_v20 = vld [vmem:[%s4957_s1 + $0x50] ss:$8 sps:$4 sm:$0xff]   ;;  %v3922_v21 = vld [vmem:[%s4957_s1 + $0x64] ss:$8 sps:$4 sm:$0xff]  }
   0x8   :  { %120 = vmatprep.subr.bf16.mxu0 %v3908_v6  ;;  %v3920_v23 = vld [vmem:[%s4957_s1 + $0x60] ss:$8 sps:$4 sm:$0xff]   ;;  %v3925_v24 = vld [vmem:[%s4957_s1 + $0x74] ss:$8 sps:$4 sm:$0xff]   ;;  %v3923_v25 = vld [vmem:[%s4957_s1 + $0x70] ss:$8 sps:$4 sm:$0xff]  }
   0x9   :  { %v3928_v28 = vld [vmem:[%s4957_s1 + $0x84] ss:$8 sps:$4 sm:$0xff]   ;;  %v3926_v30 = vld [vmem:[%s4957_s1 + $0x80] ss:$8 sps:$4 sm:$0xff]   ;;  %v3931_v31 = vld [vmem:[%s4957_s1 + $0x94] ss:$8 sps:$4 sm:$0xff]  }
   0xa   :  { %v3929_v32 = vld [vmem:[%s4957_s1 + $0x90] ss:$8 sps:$4 sm:$0xff]   ;;  %v3934_v34 = vld [vmem:[%s4957_s1 + $0xa4] ss:$8 sps:$4 sm:$0xff]   ;;  %v3932_v36 = vld [vmem:[%s4957_s1 + $0xa0] ss:$8 sps:$4 sm:$0xff]  }
   0xb   :  { %121 = vmatpush1.bf16.msra.mxu0 %v3910_v8  ;;  %v3937_v37 = vld [vmem:[%s4957_s1 + $0xb4] ss:$8 sps:$4 sm:$0xff]   ;;  %v3935_v38 = vld [vmem:[%s4957_s1 + $0xb0] ss:$8 sps:$4 sm:$0xff]   ;;  %v3940_v41 = vld [vmem:[%s4957_s1 + $0xc4] ss:$8 sps:$4 sm:$0xff]  }
   0xc   :  { %122 = vmatprep.subr.bf16.mxu0 %v3911_v9  ;;  %v3938_v43 = vld [vmem:[%s4957_s1 + $0xc0] ss:$8 sps:$4 sm:$0xff]   ;;  %v3943_v44 = vld [vmem:[%s4957_s1 + $0xd4] ss:$8 sps:$4 sm:$0xff]   ;;  %v3941_v45 = vld [vmem:[%s4957_s1 + $0xd0] ss:$8 sps:$4 sm:$0xff]  }
   0xd   :  { %v57_v13 = vld [vmem:[#allocation2 + $0x4] sm:$0xff]  ;;  %v4236_v14 = vld [vmem:[#allocation2 + $0xc] sm:$0xff]  ;;  %v4245_v18 = vld [vmem:[#allocation2 + $0x14] sm:$0xff]  ;;  %vm1558_vm3 = vsmask.f32 4352 }
   0xe   :  { %v60_v15 = vpack.c.bf16 %v4236_v14, %v57_v13  ;;  %v963_v19 = vpack.c.bf16 %v4245_v18, %v4236_v14  ;;  %v61_v22 = vpack.c.bf16 %v4245_v18, %v4245_v18  ;;  %v169_v26 = vld [vmem:[#allocation2 + $0x5] sm:$0xff]  ;;  %v170_v27 = vld [vmem:[#allocation2 + $0xd] sm:$0xff]  ;;  %v171_v33 = vld [vmem:[#allocation2 + $0x15] sm:$0xff]  ;;  %vm1971_vm4 = vsmask.f32 7424 }
   0xf   :  { %123 = vmatpush1.bf16.msra.mxu0 %v3913_v11  ;;  %v172_v29 = vpack.c.bf16 %v170_v27, %v169_v26  ;;  %v173_v35 = vpack.c.bf16 %v171_v33, %v171_v33  ;;  %v282_v39 = vld [vmem:[#allocation2 + $0x6] sm:$0xff]  ;;  %v283_v40 = vld [vmem:[#allocation2 + $0xe] sm:$0xff]  ;;  %v284_v46 = vld [vmem:[#allocation2 + $0x16] sm:$0xff]  ;;  %vm2393_vm6 = vsmask.f32 6400 }
  0x10   :  { %229 = vmatprep.subr.bf16.mxu0 %v3916_v12  ;;  %v285_v42 = vpack.c.bf16 %v283_v40, %v282_v39  ;;  %v3946_v47 = vld [vmem:[%s4957_s1 + $0xe4] ss:$8 sps:$4 sm:$0xff]   ;;  %v286_v48 = vpack.c.bf16 %v284_v46, %v284_v46  ;;  %v3944_v49 = vld [vmem:[%s4957_s1 + $0xe0] ss:$8 sps:$4 sm:$0xff]   ;;  %v3949_v50 = vld [vmem:[%s4957_s1 + $0xf4] ss:$8 sps:$4 sm:$0xff]  }
  0x11   :  { %v3947_v51 = vld [vmem:[%s4957_s1 + $0xf0] ss:$8 sps:$4 sm:$0xff]   ;;  %v395_v52 = vld [vmem:[#allocation2 + $0x7] sm:$0xff]  ;;  %v3955_v58 = vld [vmem:[%s4957_s1 + $0x114] ss:$8 sps:$4 sm:$0xff]  }
  0x12   :  { %3019 = vmatmul.mubr.msk.bf16.vlgmr.msra.gmra.mrb[0].mxu0 %vm27_vm0, %v60_v15  ;;  %v396_v53 = vld [vmem:[#allocation2 + $0xf] sm:$0xff]  ;;  %v4010_v54 = vld [vmem:[%s4959_s3 + $0x40] sm:$0xff]   ;;  %v397_v60 = vld [vmem:[#allocation2 + $0x17] sm:$0xff] }
  0x13   :  { %230 = vmatpush1.bf16.msra.mxu0 %v3914_v16  ;;  %156 = vmatprep.mubr.bf16.mxu0 %v4154_v1  ;;  %v3952_v55 = vld [vmem:[%s4957_s1 + $0x104] ss:$8 sps:$4 sm:$0xff]   ;;  %v3950_v56 = vld [vmem:[%s4957_s1 + $0x100] ss:$8 sps:$4 sm:$0xff]   ;;  %v398_v57 = vpack.c.bf16 %v396_v53, %v395_v52  ;;  %v3953_v59 = vld [vmem:[%s4957_s1 + $0x110] ss:$8 sps:$4 sm:$0xff]   ;;  %v399_v63 = vpack.c.bf16 %v397_v60, %v397_v60 }
  0x14   :  { %231 = vmatprep.subr.bf16.mxu0 %v3919_v17  ;;  %3527 = vmatprep.subr.bf16.mxu1 %v4010_v54  ;;  %v3958_v61 = vld [vmem:[%s4957_s1 + $0x124] ss:$8 sps:$4 sm:$0xff]   ;;  %v3956_v62 = vld [vmem:[%s4957_s1 + $0x120] ss:$8 sps:$4 sm:$0xff]   ;;  %v3961_v0 = vld [vmem:[%s4957_s1 + $0x134] ss:$8 sps:$4 sm:$0xff]  }
  0x15   :  { %v3959_v2 = vld [vmem:[%s4957_s1 + $0x130] ss:$8 sps:$4 sm:$0xff]   ;;  %v508_v3 = vld [vmem:[#allocation2 + $0x8] sm:$0xff]  ;;  %v3967_v8 = vld [vmem:[%s4957_s1 + $0x154] ss:$8 sps:$4 sm:$0xff]  }
  0x16   :  { %v509_v4 = vld [vmem:[#allocation2 + $0x10] sm:$0xff]  ;;  %v3964_v5 = vld [vmem:[%s4957_s1 + $0x144] ss:$8 sps:$4 sm:$0xff]   ;;  %v3962_v6 = vld [vmem:[%s4957_s1 + $0x140] ss:$8 sps:$4 sm:$0xff]  }
  0x17   :  { %232 = vmatpush1.bf16.msra.mxu0 %v3917_v20  ;;  %v511_v7 = vpack.c.bf16 %v509_v4, %v508_v3  ;;  %v3965_v9 = vld [vmem:[%s4957_s1 + $0x150] ss:$8 sps:$4 sm:$0xff]   ;;  %v3970_v11 = vld [vmem:[%s4957_s1 + $0x164] ss:$8 sps:$4 sm:$0xff]   ;;  %v3968_v12 = vld [vmem:[%s4957_s1 + $0x160] ss:$8 sps:$4 sm:$0xff]  }
  0x18   :  { %233 = vmatprep.subr.bf16.mxu0 %v3922_v21  ;;  %v510_v10 = vld [vmem:[#allocation2 + $0x18] sm:$0xff]  ;;  %v621_v17 = vld [vmem:[#allocation2 + $0x9] sm:$0xff]  ;;  %v4011_v60 = vld [vmem:[%s4959_s3] sm:$0xff]  }
  0x19   :  { %v512_v13 = vpack.c.bf16 %v510_v10, %v510_v10  ;;  %v3973_v15 = vld [vmem:[%s4957_s1 + $0x174] ss:$8 sps:$4 sm:$0xff]   ;;  %v3971_v16 = vld [vmem:[%s4957_s1 + $0x170] ss:$8 sps:$4 sm:$0xff]   ;;  %v3976_v21 = vld [vmem:[%s4957_s1 + $0x184] ss:$8 sps:$4 sm:$0xff]   ;;  %3528 = vmatpush3.bf16.msra.mxu1 %v4011_v60 }
  0x1a   :  { %3020 = vmatmul.mubr.msk.bf16.gmra.mrb[4].mxu0 %vm27_vm0, %v61_v22  ;;  %v622_v20 = vld [vmem:[#allocation2 + $0x11] sm:$0xff]  ;;  %v3974_v22 = vld [vmem:[%s4957_s1 + $0x180] ss:$8 sps:$4 sm:$0xff]   ;;  %v3982_v27 = vld [vmem:[%s4957_s1 + $0x1a4] ss:$8 sps:$4 sm:$0xff]  }
  0x1b   :  { %234 = vmatpush1.bf16.msra.mxu0 %v3920_v23  ;;  %261 = vmatprep.mubr.bf16.mxu0 %v4154_v1  ;;  %v624_v23 = vpack.c.bf16 %v622_v20, %v621_v17  ;;  %v623_v26 = vld [vmem:[#allocation2 + $0x19] sm:$0xff]  ;;  %v3994_v40 = vld [vmem:[%s4957_s1 + $0x1e4] ss:$8 sps:$4 sm:$0xff]   ;;  %v4015_v18 = vld [vmem:[%s4959_s3 + $0x10] sm:$0xff]  }
  0x1c   :  { %235 = vmatprep.subr.bf16.mxu0 %v3925_v24  ;;  %v3979_v24 = vld [vmem:[%s4957_s1 + $0x194] ss:$8 sps:$4 sm:$0xff]   ;;  %v4006_v53 = vld [vmem:[%s4957_s1 + $0x224] ss:$8 sps:$4 sm:$0xff]  }
  0x1d   :  { %v735_v33 = vld [vmem:[#allocation2 + $0x12] sm:$0xff]  ;;  %v736_v39 = vld [vmem:[#allocation2 + $0x1a] sm:$0xff]  ;;  %v4013_v14 = vld [vmem:[%s4959_s3 + $0x8] sm:$0xff]  }
  0x1e   :  { %v848_v46 = vld [vmem:[#allocation2 + $0x13] sm:$0xff]  ;;  %v849_v52 = vld [vmem:[#allocation2 + $0x1b] sm:$0xff]  ;;  %v4021_v3 = vld [vmem:[%s4959_s3 + $0x28] sm:$0xff]  }
  0x1f   :  { %236 = vmatpush1.bf16.msra.mxu0 %v3923_v25  ;;  %v3977_v25 = vld [vmem:[%s4957_s1 + $0x190] ss:$8 sps:$4 sm:$0xff]   ;;  %v851_v54 = vpack.c.bf16 %v849_v52, %v849_v52 }
  0x20   :  { %342 = vmatprep.subr.bf16.mxu0 %v3928_v28  ;;  %v3980_v28 = vld [vmem:[%s4957_s1 + $0x1a0] ss:$8 sps:$4 sm:$0xff]   ;;  %v4022_v4 = vld [vmem:[%s4959_s3 + $0x70] sm:$0xff]  }
  0x22   :  { %3037 = vmatmul.mubr.msk.bf16.vlgmr.msra.gmra.mrb[0].mxu0 %vm27_vm0, %v172_v29  ;;  %v625_v29 = vpack.c.bf16 %v623_v26, %v623_v26 }
  0x23   :  { %343 = vmatpush1.bf16.msra.mxu0 %v3926_v30  ;;  %269 = vmatprep.mubr.bf16.mxu0 %v4154_v1  ;;  %v3985_v30 = vld [vmem:[%s4957_s1 + $0x1b4] ss:$8 sps:$4 sm:$0xff]  }
  0x24   :  { %344 = vmatprep.subr.bf16.mxu0 %v3931_v31  ;;  %v3983_v31 = vld [vmem:[%s4957_s1 + $0x1b0] ss:$8 sps:$4 sm:$0xff]  }
  0x27   :  { %345 = vmatpush1.bf16.msra.mxu0 %v3929_v32  ;;  %v734_v32 = vld [vmem:[#allocation2 + $0xa] sm:$0xff] }
  0x28   :  { %346 = vmatprep.subr.bf16.mxu0 %v3934_v34  ;;  %v3988_v34 = vld [vmem:[%s4957_s1 + $0x1c4] ss:$8 sps:$4 sm:$0xff]  }
  0x2a   :  { %3038 = vmatmul.mubr.msk.bf16.gmra.mrb[4].mxu0 %vm27_vm0, %v173_v35  ;;  %v3986_v35 = vld [vmem:[%s4957_s1 + $0x1c0] ss:$8 sps:$4 sm:$0xff]  }
  0x2b   :  { %347 = vmatpush1.bf16.msra.mxu0 %v3932_v36  ;;  %374 = vmatprep.mubr.bf16.mxu0 %v4154_v1  ;;  %v737_v36 = vpack.c.bf16 %v735_v33, %v734_v32 }
  0x2c   :  { %348 = vmatprep.subr.bf16.mxu0 %v3937_v37  ;;  %v3991_v37 = vld [vmem:[%s4957_s1 + $0x1d4] ss:$8 sps:$4 sm:$0xff]  }
  0x2f   :  { %349 = vmatpush1.bf16.msra.mxu0 %v3935_v38  ;;  %v3989_v38 = vld [vmem:[%s4957_s1 + $0x1d0] ss:$8 sps:$4 sm:$0xff]  }
  0x30   :  { %455 = vmatprep.subr.bf16.mxu0 %v3940_v41  ;;  %v3992_v41 = vld [vmem:[%s4957_s1 + $0x1e0] ss:$8 sps:$4 sm:$0xff]  }
  0x32   :  { %3055 = vmatmul.mubr.msk.bf16.vlgmr.msra.gmra.mrb[0].mxu0 %vm27_vm0, %v285_v42  ;;  %v738_v42 = vpack.c.bf16 %v736_v39, %v736_v39 }
  0x33   :  { %456 = vmatpush1.bf16.msra.mxu0 %v3938_v43  ;;  %382 = vmatprep.mubr.bf16.mxu0 %v4154_v1  ;;  %v3997_v43 = vld [vmem:[%s4957_s1 + $0x1f4] ss:$8 sps:$4 sm:$0xff]  }
  0x34   :  { %457 = vmatprep.subr.bf16.mxu0 %v3943_v44  ;;  %v3995_v44 = vld [vmem:[%s4957_s1 + $0x1f0] ss:$8 sps:$4 sm:$0xff]  }
  0x37   :  { %458 = vmatpush1.bf16.msra.mxu0 %v3941_v45  ;;  %v847_v45 = vld [vmem:[#allocation2 + $0xb] sm:$0xff] }
  0x38   :  { %459 = vmatprep.subr.bf16.mxu0 %v3946_v47  ;;  %v4000_v47 = vld [vmem:[%s4957_s1 + $0x204] ss:$8 sps:$4 sm:$0xff]  }
  0x3a   :  { %3056 = vmatmul.mubr.msk.bf16.gmra.mrb[4].mxu0 %vm27_vm0, %v286_v48  ;;  %v3998_v48 = vld [vmem:[%s4957_s1 + $0x200] ss:$8 sps:$4 sm:$0xff]  }
  0x3b   :  { %460 = vmatpush1.bf16.msra.mxu0 %v3944_v49  ;;  %487 = vmatprep.mubr.bf16.mxu0 %v4154_v1  ;;  %v850_v49 = vpack.c.bf16 %v848_v46, %v847_v45 }
  0x3c   :  { %461 = vmatprep.subr.bf16.mxu0 %v3949_v50  ;;  %v4003_v50 = vld [vmem:[%s4957_s1 + $0x214] ss:$8 sps:$4 sm:$0xff]  }
  0x3f   :  { %462 = vmatpush1.bf16.msra.mxu0 %v3947_v51  ;;  %v4001_v51 = vld [vmem:[%s4957_s1 + $0x210] ss:$8 sps:$4 sm:$0xff]  }
  0x40   :  { %568 = vmatprep.subr.bf16.mxu0 %v3952_v55  ;;  %v4004_v55 = vld [vmem:[%s4957_s1 + $0x220] ss:$8 sps:$4 sm:$0xff]  }
  0x42   :  { %3073 = vmatmul.mubr.msk.bf16.vlgmr.msra.gmra.mrb[0].mxu0 %vm27_vm0, %v398_v57  ;;  %v4007_v57 = vld [vmem:[%s4957_s1 + $0x230] ss:$8 sps:$4 sm:$0xff]  }
  0x43   :  { %569 = vmatpush1.bf16.msra.mxu0 %v3950_v56  ;;  %495 = vmatprep.mubr.bf16.mxu0 %v4154_v1  ;;  %v4009_v56 = vld [vmem:[%s4957_s1 + $0x234] ss:$8 sps:$4 sm:$0xff]  }
  0x44   :  { %570 = vmatprep.subr.bf16.mxu0 %v3955_v58  ;;  %v962_v58 = vld [vmem:[#allocation2 + $0x1c] sm:$0xff] }
  0x47   :  { %571 = vmatpush1.bf16.msra.mxu0 %v3953_v59  ;;  %v964_v59 = vpack.c.bf16 %v962_v58, %v962_v58 }
  0x48   :  { %572 = vmatprep.subr.bf16.mxu0 %v3958_v61  ;;  %v4012_v61 = vld [vmem:[%s4959_s3 + $0x48] sm:$0xff]  }
  0x49   :  { %3529 = vmatprep.subr.bf16.mxu1 %v4012_v61 }
  0x4a   :  { %3074 = vmatmul.mubr.msk.bf16.gmra.mrb[4].mxu0 %vm27_vm0, %v399_v63  ;;  %3530 = vmatpush3.bf16.msra.mxu1 %v4013_v14  ;;  %v4018_v63 = vld [vmem:[%s4959_s3 + $0x60] sm:$0xff]  }
  0x4b   :  { %573 = vmatpush1.bf16.msra.mxu0 %v3956_v62  ;;  %600 = vmatprep.mubr.bf16.mxu0 %v4154_v1  ;;  %v4017_v62 = vld [vmem:[%s4959_s3 + $0x18] sm:$0xff]  }
  0x4c   :  { %574 = vmatprep.subr.bf16.mxu0 %v3961_v0  ;;  %v4019_v0 = vld [vmem:[%s4959_s3 + $0x20] sm:$0xff]  }
  0x4f   :  { %575 = vmatpush1.bf16.msra.mxu0 %v3959_v2  ;;  %v4020_v2 = vld [vmem:[%s4959_s3 + $0x68] sm:$0xff]  }
  0x50   :  { %681 = vmatprep.subr.bf16.mxu0 %v3964_v5  ;;  %v4023_v5 = vld [vmem:[%s4959_s3 + $0x30] sm:$0xff]  }
  0x52   :  { %3091 = vmatmul.mubr.msk.bf16.vlgmr.msra.gmra.mrb[0].mxu0 %vm27_vm0, %v511_v7  ;;  %v4025_v7 = vld [vmem:[%s4959_s3 + $0x38] sm:$0xff]  }
  0x53   :  { %682 = vmatpush1.bf16.msra.mxu0 %v3962_v6  ;;  %608 = vmatprep.mubr.bf16.mxu0 %v4154_v1  ;;  %v4024_v6 = vld [vmem:[%s4959_s3 + $0x78] sm:$0xff]  }
  0x54   :  { %683 = vmatprep.subr.bf16.mxu0 %v3967_v8  ;;  %v4026_v8 = vld [vmem:[%s4959_s3 + $0xc0] sm:$0xff]  }
  0x57   :  { %684 = vmatpush1.bf16.msra.mxu0 %v3965_v9  ;;  %v47_v9 = vlaneseq }
  0x58   :  { %685 = vmatprep.subr.bf16.mxu0 %v3970_v11 }
  0x59   :  { %v48_v10 = vshrl.u32 %v47_v9, 7 }
  0x5a   :  { %3092 = vmatmul.mubr.msk.bf16.gmra.mrb[4].mxu0 %vm27_vm0, %v512_v13 }
  0x5b   :  { %686 = vmatpush1.bf16.msra.mxu0 %v3968_v12  ;;  %713 = vmatprep.mubr.bf16.mxu0 %v4154_v1  ;;  %v49_v11 = vsub.s32 0, %v48_v10  ;;  %v45_v12 = vld [vmem:[%s4960_s2] sm:$0x3]  ;;  %v53_v13 = vsub.s32 1, %v48_v10  ;;  %v4032_v10 = vld [vmem:[%s4959_s3 + $0xd8] sm:$0xff]  }
  0x5c   :  { %687 = vmatprep.subr.bf16.mxu0 %v3973_v15 }
  0x5d   :  { %v50_v15 = vrot.slane %v45_v12, %v49_v11 }
  0x5f   :  { %688 = vmatpush1.bf16.msra.mxu0 %v3971_v16  ;;  %v54_v16 = vrot.slane %v45_v12, %v53_v13  ;;  %v4033_v12 = vld [vmem:[%s4959_s3 + $0x98] sm:$0xff]   ;;  %v4034_v13 = vld [vmem:[%s4959_s3 + $0xe0] sm:$0xff]  }
  0x60   :  { %794 = vmatprep.subr.bf16.mxu0 %v3976_v21 }
  0x62   :  { %3109 = vmatmul.mubr.msk.bf16.vlgmr.msra.gmra.mrb[0].mxu0 %vm27_vm0, %v624_v23 }
  0x63   :  { %795 = vmatpush1.bf16.msra.mxu0 %v3974_v22  ;;  %721 = vmatprep.mubr.bf16.mxu0 %v4154_v1 }
  0x64   :  { %796 = vmatprep.subr.bf16.mxu0 %v3979_v24 }
  0x67   :  { %797 = vmatpush1.bf16.msra.mxu0 %v3977_v25 }
  0x68   :  { %798 = vmatprep.subr.bf16.mxu0 %v3982_v27 }
  0x6a   :  { %3110 = vmatmul.mubr.msk.bf16.gmra.mrb[4].mxu0 %vm27_vm0, %v625_v29 }
  0x6b   :  { %799 = vmatpush1.bf16.msra.mxu0 %v3980_v28  ;;  %826 = vmatprep.mubr.bf16.mxu0 %v4154_v1 }
  0x6c   :  { %800 = vmatprep.subr.bf16.mxu0 %v3985_v30 }
  0x6f   :  { %801 = vmatpush1.bf16.msra.mxu0 %v3983_v31 }
  0x70   :  { %907 = vmatprep.subr.bf16.mxu0 %v3988_v34 }
  0x72   :  { %3127 = vmatmul.mubr.msk.bf16.vlgmr.msra.gmra.mrb[0].mxu0 %vm27_vm0, %v737_v36  ;;  %v1088_v36 = vld [vmem:[#allocation3] sm:$0xe0] }
  0x73   :  { %908 = vmatpush1.bf16.msra.mxu0 %v3986_v35  ;;  %834 = vmatprep.mubr.bf16.mxu0 %v4154_v1  ;;  %v1089_v35 = vld [vmem:[#allocation3 + $0x8] sm:$0xe0] }
  0x74   :  { %909 = vmatprep.subr.bf16.mxu0 %v3991_v37 }
  0x77   :  { %910 = vmatpush1.bf16.msra.mxu0 %v3989_v38 }
  0x78   :  { %911 = vmatprep.subr.bf16.mxu0 %v3994_v40 }
  0x7a   :  { %3128 = vmatmul.mubr.msk.bf16.gmra.mrb[4].mxu0 %vm27_vm0, %v738_v42 }
  0x7b   :  { %912 = vmatpush1.bf16.msra.mxu0 %v3992_v41  ;;  %939 = vmatprep.mubr.bf16.mxu0 %v4154_v1 }
  0x7c   :  { %913 = vmatprep.subr.bf16.mxu0 %v3997_v43  ;;  %v4540_v43 = vld [vmem:[#allocation3] sm:$0xff] }
  0x7f   :  { %914 = vmatpush1.bf16.msra.mxu0 %v3995_v44 }
  0x80   :  { %1020 = vmatprep.subr.bf16.mxu0 %v4000_v47 }
  0x82   :  { %3145 = vmatmul.mubr.msk.bf16.vlgmr.msra.gmra.mrb[0].mxu0 %vm27_vm0, %v850_v49 }
  0x83   :  { %1021 = vmatpush1.bf16.msra.mxu0 %v3998_v48  ;;  %947 = vmatprep.mubr.bf16.mxu0 %v4154_v1 }
  0x84   :  { %1022 = vmatprep.subr.bf16.mxu0 %v4003_v50 }
  0x87   :  { %1023 = vmatpush1.bf16.msra.mxu0 %v4001_v51 }
  0x88   :  { %1024 = vmatprep.subr.bf16.mxu0 %v4006_v53 }
  0x8a   :  { %3146 = vmatmul.mubr.msk.bf16.gmra.mrb[4].mxu0 %vm27_vm0, %v851_v54 }
  0x8b   :  { %1025 = vmatpush1.bf16.msra.mxu0 %v4004_v55  ;;  %1052 = vmatprep.mubr.bf16.mxu0 %v4154_v1 }
  0x8c   :  { %1026 = vmatprep.subr.bf16.mxu0 %v4009_v56 }
  0x8f   :  { %1027 = vmatpush1.bf16.msra.mxu0 %v4007_v57 }
  0x92   :  { %3163 = vmatmul.mubr.msk.bf16.vlgmr.msra.gmra.mrb[0].mxu0 %vm27_vm0, %v963_v19  ;;  %v4016_v19 = vld [vmem:[%s4959_s3 + $0x58] sm:$0xff]  }
  0x93   :  { %1060 = vmatprep.mubr.bf16.mxu0 %v4154_v1  ;;  %v4014_v1 = vld [vmem:[%s4959_s3 + $0x50] sm:$0xff]  }
  0x94   :  { %3531 = vmatprep.subr.bf16.mxu1 %v4014_v1 }
  0x95   :  { %3532 = vmatpush3.bf16.msra.mxu1 %v4015_v18  ;;  %v4027_v18 = vld [vmem:[%s4959_s3 + $0x80] sm:$0xff]  }
  0x96   :  { %3533 = vmatprep.subr.bf16.mxu1 %v4016_v19 }
  0x99   :  { %3534 = vmatpush3.bf16.msra.mxu1 %v4017_v62 }
  0x9a   :  { %3164 = vmatmul.mubr.msk.bf16.gmra.mrb[4].mxu0 %vm27_vm0, %v964_v59  ;;  %3535 = vmatprep.subr.bf16.mxu1 %v4018_v63  ;;  %v4028_v63 = vld [vmem:[%s4959_s3 + $0xc8] sm:$0xff]  }
  0x9d   :  { %3536 = vmatpush3.bf16.msra.mxu1 %v4019_v0 }
  0x9e   :  { %3537 = vmatprep.subr.bf16.mxu1 %v4020_v2  ;;  %v1317_v2 = vld [vmem:[#allocation3 + $0x8] sm:$0xc0] }
  0xa1   :  { %3538 = vmatpush3.bf16.msra.mxu1 %v4021_v3 }
  0xa2   :  { %3539 = vmatprep.subr.bf16.mxu1 %v4022_v4  ;;  %v4029_v4 = vld [vmem:[%s4959_s3 + $0x88] sm:$0xff]  }
  0xa5   :  { %3540 = vmatpush3.bf16.msra.mxu1 %v4023_v5  ;;  %v4030_v5 = vld [vmem:[%s4959_s3 + $0xd0] sm:$0xff]  }
  0xa6   :  { %3541 = vmatprep.subr.bf16.mxu1 %v4024_v6 }
  0xa9   :  { %3542 = vmatpush3.bf16.msra.mxu1 %v4025_v7 }
  0xaa   :  { %3555 = vmatprep.subr.bf16.mxu1 %v4026_v8  ;;  %v4031_v8 = vld [vmem:[%s4959_s3 + $0x90] sm:$0xff]  }
 0x165   :  { %v1054_v17 = vpop.f32.mrb[0].mxu0 }
 0x166   :  { %v3813_v20 = vadd.f32 %v1054_v17, %v50_v15  ;;  %v1056_v21 = vpop.f32.mrb[1].mxu0  ;;  %v4037_v17 = vld [vmem:[%s4959_s3 + $0xa8] sm:$0xff]  }
 0x167   :  { %v3814_v22 = vadd.f32 %v1056_v21, %v54_v16  ;;  %v1058_v23 = vpop.f32.mrb[2].mxu0 }
 0x168   :  { %v4526_v24 = vmax.f32 %v3813_v20, 0.0  ;;  %v1059_v25 = vpop.f32.mrb[3].mxu0  ;;  %v4038_v20 = vld [vmem:[%s4959_s3 + $0xf0] sm:$0xff]  }
 0x169   :  { %v4528_v26 = vmax.f32 %v3814_v22, 0.0  ;;  %v4039_v22 = vld [vmem:[%s4959_s3 + $0xb0] sm:$0xff]   ;;  %v4040_v25 = vld [vmem:[%s4959_s3 + $0xf8] sm:$0xff]  }
 0x16a   :  { %1075 = vst [vmem:[#allocation3 + $0x10] sm:$0xff] %v4526_v24  ;;  %v1096_v38 = vpack.c.bf16 %v4526_v24, %v1088_v36 }
 0x16b   :  { %1076 = vst [vmem:[#allocation3 + $0x18] sm:$0xff] %v4528_v26  ;;  %v1097_v37 = vpack.c.bf16 %v4528_v26, %v1089_v35  ;;  %v1321_v6 = vpack.c.bf16 %v4528_v26, %v1317_v2  ;;  %v4042_v35 = vld [vmem:[%s4959_s3 + $0x140] sm:$0xff]  }
 0x16c   :  { %v1134_v45 = vshrl.u32 %v1096_v38, 16  ;;  %v1137_v46 = vshll.u32 %v1096_v38, 16 }
 0x16d   :  { %v1062_v27 = vpop.f32.mrb[4].mxu0  ;;  %v1151_v39 = vshrl.u32 %v1097_v37, 16  ;;  %v1154_v40 = vshll.u32 %v1097_v37, 16  ;;  %v1365_v9 = vrot.slane %v1321_v6, 3  ;;  %v4056_v6 = vld [vmem:[%s4959_s3 + $0x178] sm:$0xff]  }
 0x16e   :  { %v3815_v28 = vadd.f32 %v1062_v27, %v50_v15  ;;  %v1064_v29 = vpop.f32.mrb[5].mxu0  ;;  %v1136_v54 = vrot.slane %v1134_v45, 2  ;;  %v1139_v55 = vrot.slane %v1137_v46, 3  ;;  %v4035_v15 = vld [vmem:[%s4959_s3 + $0xa0] sm:$0xff]   ;;  %v1316_v27 = vld [vmem:[#allocation3] sm:$0xc0] }
 0x16f   :  { %v3816_v30 = vadd.f32 %v1064_v29, %v54_v16  ;;  %v1066_v31 = vpop.f32.mrb[6].mxu0  ;;  %v1153_v50 = vrot.slane %v1151_v39, 2  ;;  %v1156_v51 = vrot.slane %v1154_v40, 3  ;;  %v4036_v16 = vld [vmem:[%s4959_s3 + $0xe8] sm:$0xff]   ;;  %v1518_v29 = vld [vmem:[#allocation3 + $0x8] sm:$0x80] }
 0x170   :  { %v4532_v32 = vmax.f32 %v3815_v28, 0.0  ;;  %v1067_v33 = vpop.f32.mrb[7].mxu0  ;;  %v1140_v1 = vor.u32 %v1139_v55, %v1136_v54  ;;  %v4041_v31 = vld [vmem:[%s4959_s3 + $0xb8] sm:$0xff]   ;;  %v1522_v36 = vpack.c.bf16 %v4528_v26, %v1518_v29  ;;  %v4047_v54 = vld [vmem:[%s4959_s3 + $0x110] sm:$0xff]   ;;  %v4066_v29 = vld [vmem:[%s4959_s3 + $0x1e0] sm:$0xff]  }
 0x171   :  { %v4534_v34 = vmax.f32 %v3816_v30, 0.0  ;;  %v1157_v61 = vor.u32 %v1156_v51, %v1153_v50  ;;  %v1320_v33 = vpack.c.bf16 %v4526_v24, %v1316_v27  ;;  %v4046_v50 = vld [vmem:[%s4959_s3 + $0x150] sm:$0xff]   ;;  %v1745_v27 = vpack.c.bf16 %v4540_v43, %v4528_v26  ;;  %v4068_v26 = vld [vmem:[%s4959_s3 + $0x1e8] sm:$0xff]  }
 0x172   :  { %1079 = vst [vmem:[#allocation3 + $0x30] sm:$0xff] %v4532_v32  ;;  %v1580_v45 = vshll.u32 %v1522_v36, 16 }
 0x173   :  { %1080 = vst [vmem:[#allocation3 + $0x38] sm:$0xff] %v4534_v34  ;;  %v1362_v40 = vrot.slane %v1320_v33, 3  ;;  %v4070_v33 = vld [vmem:[%s4959_s3 + $0x1f0] sm:$0xff]  }
 0x179   :  { %v1094_v41 = vld [vmem:[#allocation3 + $0x30] sm:$0x1f] }
 0x17a   :  { %v1095_v42 = vld [vmem:[#allocation3 + $0x38] sm:$0x1f]  ;;  %v1098_v44 = vpack.c.bf16 %v1094_v41, %v4540_v43  ;;  %v1318_v21 = vld [vmem:[#allocation3 + $0x30] sm:$0x3f] }
 0x17b   :  { %v1099_v47 = vpack.c.bf16 %v1095_v42, %v4540_v43  ;;  %v1319_v19 = vld [vmem:[#allocation3 + $0x38] sm:$0x3f]  ;;  %v1322_v28 = vpack.c.bf16 %v1318_v21, %v4540_v43  ;;  %v4044_v42 = vld [vmem:[%s4959_s3 + $0x148] sm:$0xff]  }
 0x17c   :  { %v1142_v48 = vshrl.u32 %v1098_v44, 16  ;;  %v1145_v49 = vshll.u32 %v1098_v44, 16  ;;  %v1323_v3 = vpack.c.bf16 %v1319_v19, %v4540_v43  ;;  %v1520_v23 = vld [vmem:[#allocation3 + $0x38] sm:$0x7f]  ;;  %v1577_v44 = vshrl.u32 %v1522_v36, 16  ;;  %v4053_v19 = vld [vmem:[%s4959_s3 + $0x128] sm:$0xff]  }
 0x17d   :  { %v1159_v52 = vshrl.u32 %v1099_v47, 16  ;;  %v1162_v53 = vshll.u32 %v1099_v47, 16  ;;  %v1524_v30 = vpack.c.bf16 %v1520_v23, %v4540_v43  ;;  %v1363_v37 = vrot.slane %v1322_v28, 3  ;;  %v4043_v41 = vld [vmem:[%s4959_s3 + $0x100] sm:$0xff]   ;;  %v4061_v21 = vld [vmem:[%s4959_s3 + $0x188] sm:$0xff]   ;;  %v4063_v23 = vld [vmem:[%s4959_s3 + $0x190] sm:$0xff]  }
 0x17e   :  { %v1144_v56 = vrot.slane %v1142_v48, 2  ;;  %v1147_v57 = vrot.slane %v1145_v49, 3  ;;  %v1366_v7 = vrot.slane %v1323_v3, 3  ;;  %v4045_v49 = vld [vmem:[%s4959_s3 + $0x108] sm:$0xff]   ;;  %v1579_v51 = vrot.slane %v1577_v44, 3  ;;  %v4055_v3 = vld [vmem:[%s4959_s3 + $0x130] sm:$0xff]  }
 0x17f   :  { %v1161_v58 = vrot.slane %v1159_v52, 2  ;;  %v1164_v59 = vrot.slane %v1162_v53, 3  ;;  %v1585_v38 = vshrl.u32 %v1524_v30, 16  ;;  %v1588_v39 = vshll.u32 %v1524_v30, 16  ;;  %v4065_v28 = vld [vmem:[%s4959_s3 + $0x198] sm:$0xff]   ;;  %v4067_v30 = vld [vmem:[%s4959_s3 + $0x1a0] sm:$0xff]  }
 0x180   :  { %v1148_v60 = vor.u32 %v1147_v57, %v1144_v56  ;;  %v1367_v11 = vsel %vm1361_vm2, %v1365_v9, %v1366_v7  ;;  %v1364_v46 = vsel %vm1361_vm2, %v1362_v40, %v1363_v37  ;;  %v1582_v52 = vrot.slane %v1580_v45, 4  ;;  %v4048_v56 = vld [vmem:[%s4959_s3 + $0x158] sm:$0xff]   ;;  %v1927_v36 = vld [vmem:[#allocation3 + $0x18] sm:$0xfe] }
 0x181   :  { %v1165_v14 = vor.u32 %v1164_v59, %v1161_v58  ;;  %v1587_v47 = vrot.slane %v1585_v38, 3  ;;  %v1590_v48 = vrot.slane %v1588_v39, 4  ;;  %v4049_v58 = vld [vmem:[%s4959_s3 + $0x118] sm:$0xff]   ;;  %v4050_v59 = vld [vmem:[%s4959_s3 + $0x160] sm:$0xff]   ;;  %v1935_v38 = vpack.c.bf16 %v4540_v43, %v1927_v36 }
 0x182   :  { %v1149_v0 = vsel %vm1132_vm1, %v1140_v1, %v1148_v60  ;;  %v1583_v55 = vor.u32 %v1582_v52, %v1579_v51  ;;  %v1517_v1 = vld [vmem:[#allocation3] sm:$0x80]  ;;  %v4057_v9 = vld [vmem:[%s4959_s3 + $0x138] sm:$0xff]   ;;  %v4074_v40 = vld [vmem:[%s4959_s3 + $0x240] sm:$0xff]   ;;  %v1744_v45 = vpack.c.bf16 %v4540_v43, %v4526_v24 }
 0x183   :  { %v1166_v62 = vsel %vm1132_vm1, %v1157_v61, %v1165_v14  ;;  %v1591_v53 = vor.u32 %v1590_v48, %v1587_v47  ;;  %v4051_v61 = vld [vmem:[%s4959_s3 + $0x120] sm:$0xff]   ;;  %v4073_v39 = vld [vmem:[%s4959_s3 + $0x1b8] sm:$0xff]   ;;  %v1747_v48 = vpack.c.bf16 %v4534_v34, %v4534_v34  ;;  %v1985_v51 = vshrl.u32 %v1935_v38, 16 }
 0x184   :  { %1299 = vmatprep.mubr.bf16.mxu1 %v1166_v62  ;;  %v1521_v62 = vpack.c.bf16 %v4526_v24, %v1517_v1  ;;  %v4075_v44 = vld [vmem:[%s4959_s3 + $0x200] sm:$0xff]   ;;  %v4078_v24 = vld [vmem:[%s4959_s3 + $0x250] sm:$0xff]   ;;  %v4084_v1 = vld [vmem:[%s4959_s3 + $0x268] sm:$0xff]  }
 0x185   :  { %1300 = vmatmul.mubr.bf16.vlgmr.msra.gmra.mrb[0].mxu1 %v1149_v0  ;;  %v1592_v57 = vsel %vm1558_vm3, %v1583_v55, %v1591_v53  ;;  %v1746_v55 = vpack.c.bf16 %v4532_v32, %v4532_v32  ;;  %v4097_v36 = vld [vmem:[%s4959_s3 + $0x298] sm:$0xff]  }
 0x186   :  { %3556 = vmatpush3.bf16.msra.mxu1 %v4027_v18  ;;  %1306 = vmatprep.mubr.bf16.mxu1 %v1165_v14  ;;  %v4052_v14 = vld [vmem:[%s4959_s3 + $0x168] sm:$0xff]  }
 0x187   :  { %3557 = vmatprep.subr.bf16.mxu1 %v4028_v63  ;;  %v4054_v63 = vld [vmem:[%s4959_s3 + $0x170] sm:$0xff]  }
 0x18a   :  { %3558 = vmatpush3.bf16.msra.mxu1 %v4029_v4  ;;  %v1560_v4 = vshrl.u32 %v1521_v62, 16 }
 0x18b   :  { %3559 = vmatprep.subr.bf16.mxu1 %v4030_v5  ;;  %v1563_v5 = vshll.u32 %v1521_v62, 16  ;;  %v4086_v62 = vld [vmem:[%s4959_s3 + $0x270] sm:$0xff]  }
 0x18d   :  { %1307 = vmatmul.mubr.bf16.gmra.mrb[4].mxu1 %v1148_v60  ;;  %v1519_v60 = vld [vmem:[#allocation3 + $0x30] sm:$0x7f] }
 0x18e   :  { %3560 = vmatpush3.bf16.msra.mxu1 %v4031_v8  ;;  %1500 = vmatprep.mubr.bf16.mxu1 %v1367_v11  ;;  %v1523_v18 = vpack.c.bf16 %v1519_v60, %v4540_v43  ;;  %v1565_v11 = vrot.slane %v1563_v5, 4  ;;  %v4082_v60 = vld [vmem:[%s4959_s3 + $0x260] sm:$0xff]  }
 0x18f   :  { %3561 = vmatprep.subr.bf16.mxu1 %v4032_v10  ;;  %v1562_v10 = vrot.slane %v1560_v4, 3  ;;  %v4088_v4 = vld [vmem:[%s4959_s3 + $0x278] sm:$0xff]  }
 0x190   :  { %v1568_v0 = vshrl.u32 %v1523_v18, 16  ;;  %v1571_v2 = vshll.u32 %v1523_v18, 16 }
 0x192   :  { %3562 = vmatpush3.bf16.msra.mxu1 %v4033_v12  ;;  %v1573_v8 = vrot.slane %v1571_v2, 4  ;;  %v4058_v12 = vld [vmem:[%s4959_s3 + $0x1c0] sm:$0xff]   ;;  %v4087_v2 = vld [vmem:[%s4959_s3 + $0x230] sm:$0xff]  }
 0x193   :  { %3563 = vmatprep.subr.bf16.mxu1 %v4034_v13 }
 0x196   :  { %3564 = vmatpush3.bf16.msra.mxu1 %v4035_v15  ;;  %v1566_v15 = vor.u32 %v1565_v11, %v1562_v10  ;;  %v2154_v11 = vld [vmem:[#allocation3 + $0x48] sm:$0x3] }
 0x197   :  { %3565 = vmatprep.subr.bf16.mxu1 %v4036_v16  ;;  %v4059_v16 = vld [vmem:[%s4959_s3 + $0x180] sm:$0xff]  }
 0x19a   :  { %3566 = vmatpush3.bf16.msra.mxu1 %v4037_v17  ;;  %v4060_v17 = vld [vmem:[%s4959_s3 + $0x1c8] sm:$0xff]  }
 0x19b   :  { %3567 = vmatprep.subr.bf16.mxu1 %v4038_v20 }
 0x19e   :  { %3568 = vmatpush3.bf16.msra.mxu1 %v4039_v22  ;;  %v4062_v22 = vld [vmem:[%s4959_s3 + $0x1d0] sm:$0xff]  }
 0x19f   :  { %3569 = vmatprep.subr.bf16.mxu1 %v4040_v25  ;;  %v4064_v25 = vld [vmem:[%s4959_s3 + $0x1d8] sm:$0xff]  }
 0x1a2   :  { %3570 = vmatpush3.bf16.msra.mxu1 %v4041_v31  ;;  %v4069_v31 = vld [vmem:[%s4959_s3 + $0x1a8] sm:$0xff]  }
 0x1a3   :  { %3583 = vmatprep.subr.bf16.mxu1 %v4042_v35  ;;  %v4071_v35 = vld [vmem:[%s4959_s3 + $0x1b0] sm:$0xff]  }
 0x1a5   :  { %1501 = vmatmul.mubr.bf16.vlgmr.msra.gmra.mrb[8].mxu1 %v1364_v46  ;;  %v4076_v46 = vld [vmem:[%s4959_s3 + $0x248] sm:$0xff]  }
 0x1a6   :  { %1507 = vmatprep.mubr.bf16.mxu1 %v1366_v7  ;;  %3584 = vmatpush3.bf16.msra.mxu1 %v4043_v41  ;;  %v1570_v7 = vrot.slane %v1568_v0, 3  ;;  %v1933_v41 = vld [vmem:[#allocation3 + $0x48] sm:$0x1] }
 0x1a7   :  { %3585 = vmatprep.subr.bf16.mxu1 %v4044_v42  ;;  %v1987_v42 = vshll.u32 %v1935_v38, 16  ;;  %v1937_v47 = vpack.c.bf16 %v1933_v41, %v4534_v34  ;;  %v4099_v38 = vld [vmem:[%s4959_s3 + $0x2a0] sm:$0xff]   ;;  %v4102_v41 = vld [vmem:[%s4959_s3 + $0x2f0] sm:$0xff]  }
 0x1a8   :  { %v1574_v13 = vor.u32 %v1573_v8, %v1570_v7 }
 0x1a9   :  { %v1992_v52 = vshll.u32 %v1937_v47, 16 }
 0x1aa   :  { %3586 = vmatpush3.bf16.msra.mxu1 %v4045_v49  ;;  %v1575_v20 = vsel %vm1558_vm3, %v1566_v15, %v1574_v13  ;;  %v1989_v49 = vrot.slane %v1987_v42, 1  ;;  %v4091_v15 = vld [vmem:[%s4959_s3 + $0x280] sm:$0xff]   ;;  %v2151_v42 = vld [vmem:[#allocation3 + $0x10] sm:$0xfc] }
 0x1ab   :  { %3587 = vmatprep.subr.bf16.mxu1 %v4046_v50  ;;  %v4077_v50 = vld [vmem:[%s4959_s3 + $0x208] sm:$0xff]  }
 0x1ad   :  { %1508 = vmatmul.mubr.bf16.gmra.mrb[12].mxu1 %v1363_v37  ;;  %v4072_v37 = vld [vmem:[%s4959_s3 + $0x1f8] sm:$0xff]  }
 0x1ae   :  { %3588 = vmatpush3.bf16.msra.mxu1 %v4047_v54  ;;  %1725 = vmatprep.mubr.bf16.mxu1 %v1592_v57  ;;  %v4079_v54 = vld [vmem:[%s4959_s3 + $0x210] sm:$0xff]   ;;  %v4080_v57 = vld [vmem:[%s4959_s3 + $0x258] sm:$0xff]  }
 0x1af   :  { %3589 = vmatprep.subr.bf16.mxu1 %v4048_v56  ;;  %v1994_v56 = vrot.slane %v1992_v52, 1  ;;  %v4105_v52 = vld [vmem:[%s4959_s3 + $0x2b8] sm:$0xff]  }
 0x1b2   :  { %3590 = vmatpush3.bf16.msra.mxu1 %v4049_v58 }
 0x1b3   :  { %3591 = vmatprep.subr.bf16.mxu1 %v4050_v59  ;;  %v4081_v59 = vld [vmem:[%s4959_s3 + $0x218] sm:$0xff]  }
 0x1b6   :  { %3592 = vmatpush3.bf16.msra.mxu1 %v4051_v61  ;;  %v1926_v61 = vld [vmem:[#allocation3 + $0x10] sm:$0xfe] }
 0x1b7   :  { %3593 = vmatprep.subr.bf16.mxu1 %v4052_v14  ;;  %v4083_v14 = vld [vmem:[%s4959_s3 + $0x220] sm:$0xff]   ;;  %v1934_v18 = vpack.c.bf16 %v4540_v43, %v1926_v61 }
 0x1b9   :  { %v1975_v0 = vshll.u32 %v1934_v18, 16  ;;  %v1973_v7 = vshrl.u32 %v1934_v18, 16 }
 0x1ba   :  { %3594 = vmatpush3.bf16.msra.mxu1 %v4053_v19  ;;  %v4085_v19 = vld [vmem:[%s4959_s3 + $0x228] sm:$0xff]  }
 0x1bb   :  { %3595 = vmatprep.subr.bf16.mxu1 %v4054_v63  ;;  %v1932_v63 = vld [vmem:[#allocation3 + $0x40] sm:$0x1]  ;;  %v1977_v5 = vrot.slane %v1975_v0, 1 }
 0x1bd   :  { %v1978_v10 = vor.u32 %v1977_v5, %v1973_v7  ;;  %v4114_v7 = vld [vmem:[%s4959_s3 + $0x360] sm:$0xff]  }
 0x1be   :  { %3596 = vmatpush3.bf16.msra.mxu1 %v4055_v3  ;;  %v1936_v3 = vpack.c.bf16 %v1932_v63, %v4532_v32  ;;  %v4110_v63 = vld [vmem:[%s4959_s3 + $0x350] sm:$0xff]  }
 0x1bf   :  { %3597 = vmatprep.subr.bf16.mxu1 %v4056_v6  ;;  %v4089_v6 = vld [vmem:[%s4959_s3 + $0x238] sm:$0xff]  }
 0x1c0   :  { %v1980_v8 = vshll.u32 %v1936_v3, 16 }
 0x1c2   :  { %3598 = vmatpush3.bf16.msra.mxu1 %v4057_v9  ;;  %v4090_v9 = vld [vmem:[%s4959_s3 + $0x2c0] sm:$0xff]  }
 0x1c3   :  { %3611 = vmatprep.subr.bf16.mxu1 %v4058_v12  ;;  %v1982_v12 = vrot.slane %v1980_v8, 1  ;;  %v2352_v8 = vld [vmem:[#allocation3 + $0x10] sm:$0xf8] }
 0x1c5   :  { %1726 = vmatmul.mubr.bf16.vlgmr.msra.gmra.mrb[16].mxu1 %v1575_v20  ;;  %v1983_v20 = vsel %vm1971_vm4, %v1978_v10, %v1982_v12  ;;  %v4115_v10 = vld [vmem:[%s4959_s3 + $0x320] sm:$0xff]  }
 0x1c6   :  { %1732 = vmatprep.mubr.bf16.mxu1 %v1591_v53  ;;  %3612 = vmatpush3.bf16.msra.mxu1 %v4059_v16  ;;  %v1990_v53 = vor.u32 %v1989_v49, %v1985_v51  ;;  %v2152_v16 = vld [vmem:[#allocation3 + $0x18] sm:$0xfc]  ;;  %v2155_v49 = vpack.c.bf16 %v4540_v43, %v2151_v42 }
 0x1c7   :  { %3613 = vmatprep.subr.bf16.mxu1 %v4060_v17  ;;  %v4092_v17 = vld [vmem:[%s4959_s3 + $0x2c8] sm:$0xff]  }
 0x1c8   :  { %v1995_v58 = vsel %vm1971_vm4, %v1990_v53, %v1994_v56  ;;  %v4106_v53 = vld [vmem:[%s4959_s3 + $0x340] sm:$0xff]  }
 0x1ca   :  { %3614 = vmatpush3.bf16.msra.mxu1 %v4061_v21 }
 0x1cb   :  { %3615 = vmatprep.subr.bf16.mxu1 %v4062_v22  ;;  %v2156_v22 = vpack.c.bf16 %v4540_v43, %v2152_v16  ;;  %v4118_v16 = vld [vmem:[%s4959_s3 + $0x370] sm:$0xff]  }
 0x1cd   :  { %1733 = vmatmul.mubr.bf16.gmra.mrb[20].mxu1 %v1574_v13  ;;  %v1999_v13 = vshrl.u32 %v1937_v47, 16  ;;  %v2355_v47 = vld [vmem:[#allocation3 + $0x48] sm:$0x7] }
 0x1ce   :  { %3616 = vmatpush3.bf16.msra.mxu1 %v4063_v23  ;;  %1909 = vmatprep.mubr.bf16.mxu1 %v1745_v27  ;;  %v2158_v23 = vpack.c.bf16 %v2154_v11, %v4534_v34  ;;  %v4094_v27 = vld [vmem:[%s4959_s3 + $0x2d0] sm:$0xff]   ;;  %v2359_v51 = vpack.c.bf16 %v2355_v47, %v4534_v34  ;;  %v4107_v34 = vld [vmem:[%s4959_s3 + $0x300] sm:$0xff]   ;;  %v4116_v11 = vld [vmem:[%s4959_s3 + $0x368] sm:$0xff]  }
 0x1cf   :  { %3617 = vmatprep.subr.bf16.mxu1 %v4064_v25  ;;  %v2001_v21 = vor.u32 %v1999_v13, %v1994_v56  ;;  %v4093_v25 = vld [vmem:[%s4959_s3 + $0x288] sm:$0xff]  }
 0x1d2   :  { %3618 = vmatpush3.bf16.msra.mxu1 %v4065_v28  ;;  %v1996_v28 = vshrl.u32 %v1936_v3, 16  ;;  %v4111_v3 = vld [vmem:[%s4959_s3 + $0x310] sm:$0xff]  }
 0x1d3   :  { %3619 = vmatprep.subr.bf16.mxu1 %v4066_v29  ;;  %v2200_v29 = vrot.slane %v2156_v22, 1 }
 0x1d6   :  { %3620 = vmatpush3.bf16.msra.mxu1 %v4067_v30  ;;  %v2201_v30 = vrot.slane %v2158_v23, 1 }
 0x1d7   :  { %3621 = vmatprep.subr.bf16.mxu1 %v4068_v26  ;;  %v4095_v26 = vld [vmem:[%s4959_s3 + $0x290] sm:$0xff]  }
 0x1da   :  { %3622 = vmatpush3.bf16.msra.mxu1 %v4069_v31  ;;  %v1998_v31 = vor.u32 %v1996_v28, %v1982_v12  ;;  %v2356_v12 = vpack.c.bf16 %v4540_v43, %v2352_v8  ;;  %v4127_v8 = vld [vmem:[%s4962_s5 + $0x28] sm:$0xff]  }
 0x1db   :  { %3623 = vmatprep.subr.bf16.mxu1 %v4070_v33  ;;  %v4096_v33 = vld [vmem:[%s4959_s3 + $0x2d8] sm:$0xff]  }
 0x1de   :  { %3624 = vmatpush3.bf16.msra.mxu1 %v4071_v35  ;;  %v2202_v35 = vsel %vm2196_vm5, %v2200_v29, %v2201_v30  ;;  %v4121_v29 = vld [vmem:[%s4959_s3 + $0x338] sm:$0xff]  }
 0x1df   :  { %3625 = vmatprep.subr.bf16.mxu1 %v4072_v37  ;;  %v4098_v37 = vld [vmem:[%s4959_s3 + $0x2e0] sm:$0xff]  }
 0x1e2   :  { %3626 = vmatpush3.bf16.msra.mxu1 %v4073_v39  ;;  %v4100_v39 = vld [vmem:[%s4959_s3 + $0x2e8] sm:$0xff]  }
 0x1e3   :  { %3639 = vmatprep.subr.bf16.mxu1 %v4074_v40  ;;  %v4101_v40 = vld [vmem:[%s4959_s3 + $0x2a8] sm:$0xff]  }
 0x1e5   :  { %1910 = vmatmul.mubr.bf16.vlgmr.msra.gmra.mrb[24].mxu1 %v1744_v45  ;;  %v4103_v45 = vld [vmem:[%s4959_s3 + $0x2b0] sm:$0xff]  }
 0x1e6   :  { %1916 = vmatprep.mubr.bf16.mxu1 %v1747_v48  ;;  %3640 = vmatpush3.bf16.msra.mxu1 %v4075_v44  ;;  %v2153_v44 = vld [vmem:[#allocation3 + $0x40] sm:$0x3]  ;;  %v4104_v48 = vld [vmem:[%s4959_s3 + $0x2f8] sm:$0xff]  }
 0x1e7   :  { %3641 = vmatprep.subr.bf16.mxu1 %v4076_v46  ;;  %v2353_v46 = vld [vmem:[#allocation3 + $0x18] sm:$0xf8] }
 0x1ea   :  { %3642 = vmatpush3.bf16.msra.mxu1 %v4077_v50  ;;  %v2157_v50 = vpack.c.bf16 %v2153_v44, %v4532_v32 }
 0x1eb   :  { %3643 = vmatprep.subr.bf16.mxu1 %v4078_v24  ;;  %v2357_v24 = vpack.c.bf16 %v4540_v43, %v2353_v46  ;;  %v4119_v43 = vld [vmem:[%s4959_s3 + $0x330] sm:$0xff]  }
 0x1ed   :  { %1917 = vmatmul.mubr.bf16.gmra.mrb[28].mxu1 %v1746_v55  ;;  %v2198_v55 = vrot.slane %v2157_v50, 1  ;;  %v2412_v56 = vshrl.u32 %v2357_v24, 16 }
 0x1ee   :  { %3644 = vmatpush3.bf16.msra.mxu1 %v4079_v54  ;;  %2134 = vmatprep.mubr.bf16.mxu1 %v1995_v58  ;;  %v2197_v54 = vrot.slane %v2155_v49, 1  ;;  %v2420_v58 = vshrl.u32 %v2359_v51, 16 }
 0x1ef   :  { %3645 = vmatprep.subr.bf16.mxu1 %v4080_v57  ;;  %v2415_v57 = vshll.u32 %v2357_v24, 16 }
 0x1f0   :  { %v2199_v61 = vsel %vm2196_vm5, %v2197_v54, %v2198_v55  ;;  %v2422_v18 = vrot.slane %v2420_v58, 1 }
 0x1f2   :  { %3646 = vmatpush3.bf16.msra.mxu1 %v4081_v59  ;;  %v2423_v59 = vshll.u32 %v2359_v51, 16 }
 0x1f3   :  { %3647 = vmatprep.subr.bf16.mxu1 %v4082_v60  ;;  %v4108_v60 = vld [vmem:[%s4959_s3 + $0x348] sm:$0xff]  }
 0x1f6   :  { %3648 = vmatpush3.bf16.msra.mxu1 %v4083_v14  ;;  %v2414_v14 = vrot.slane %v2412_v56, 1 }
 0x1f7   :  { %3649 = vmatprep.subr.bf16.mxu1 %v4084_v1  ;;  %v2417_v1 = vrot.slane %v2415_v57, 2 }
 0x1f9   :  { %v2418_v0 = vor.u32 %v2417_v1, %v2414_v14 }
 0x1fa   :  { %3650 = vmatpush3.bf16.msra.mxu1 %v4085_v19  ;;  %v2425_v19 = vrot.slane %v2423_v59, 2  ;;  %v4122_v59 = vld [vmem:[%s4962_s5] sm:$0xff]  }
 0x1fb   :  { %3651 = vmatprep.subr.bf16.mxu1 %v4086_v62  ;;  %v4109_v62 = vld [vmem:[%s4959_s3 + $0x308] sm:$0xff]   ;;  %3753 = vmatprep.subr.bf16.mxu0 %v4122_v59 }
 0x1fc   :  { %3754 = vmatpush3.bf16.msra.mxu0 %v4122_v59 }
 0x1fe   :  { %3652 = vmatpush3.bf16.msra.mxu1 %v4087_v2  ;;  %v2426_v2 = vor.u32 %v2425_v19, %v2422_v18 }
 0x1ff   :  { %3653 = vmatprep.subr.bf16.mxu1 %v4088_v4  ;;  %v4112_v4 = vld [vmem:[%s4959_s3 + $0x358] sm:$0xff]  }
 0x200   :  { %v2427_v5 = vsel %vm2393_vm6, %v2418_v0, %v2426_v2  ;;  %v4125_v0 = vld [vmem:[%s4962_s5 + $0x18] sm:$0xff]  }
 0x202   :  { %3654 = vmatpush3.bf16.msra.mxu1 %v4089_v6  ;;  %v4113_v6 = vld [vmem:[%s4959_s3 + $0x318] sm:$0xff]  }
 0x203   :  { %3667 = vmatprep.subr.bf16.mxu1 %v4090_v9  ;;  %v2354_v9 = vld [vmem:[#allocation3 + $0x40] sm:$0x7] }
 0x204   :  { %v2358_v13 = vpack.c.bf16 %v2354_v9, %v4532_v32  ;;  %v4120_v32 = vld [vmem:[%s4959_s3 + $0x378] sm:$0xff]   ;;  %v4128_v9 = vld [vmem:[%s4962_s5 + $0x30] sm:$0xff]  }
 0x205   :  { %2135 = vmatmul.mubr.bf16.vlgmr.msra.gmra.mrb[32].mxu1 %v1983_v20  ;;  %v2398_v20 = vshll.u32 %v2356_v12, 16 }
 0x206   :  { %2141 = vmatprep.mubr.bf16.mxu1 %v2001_v21  ;;  %3668 = vmatpush3.bf16.msra.mxu1 %v4091_v15  ;;  %v4117_v15 = vld [vmem:[%s4959_s3 + $0x328] sm:$0xff]   ;;  %v2403_v21 = vshrl.u32 %v2358_v13, 16  ;;  %v2406_v22 = vshll.u32 %v2358_v13, 16 }
 0x207   :  { %3669 = vmatprep.subr.bf16.mxu1 %v4092_v17  ;;  %v2395_v17 = vshrl.u32 %v2356_v12, 16 }
 0x208   :  { %v2408_v28 = vrot.slane %v2406_v22, 2 }
 0x209   :  { %v2397_v23 = vrot.slane %v2395_v17, 1 }
 0x20a   :  { %3670 = vmatpush3.bf16.msra.mxu1 %v4093_v25  ;;  %v2400_v25 = vrot.slane %v2398_v20, 2 }
 0x20b   :  { %3671 = vmatprep.subr.bf16.mxu1 %v4094_v27  ;;  %v2405_v27 = vrot.slane %v2403_v21, 1 }
 0x20d   :  { %2142 = vmatmul.mubr.bf16.gmra.mrb[36].mxu1 %v1998_v31 }
 0x20e   :  { %3672 = vmatpush3.bf16.msra.mxu1 %v4095_v26  ;;  %2335 = vmatprep.mubr.bf16.mxu1 %v2202_v35  ;;  %v2409_v26 = vor.u32 %v2408_v28, %v2405_v27 }
 0x20f   :  { %3673 = vmatprep.subr.bf16.mxu1 %v4096_v33 }
 0x212   :  { %3674 = vmatpush3.bf16.msra.mxu1 %v4097_v36 }
 0x213   :  { %3675 = vmatprep.subr.bf16.mxu1 %v4098_v37 }
 0x216   :  { %3676 = vmatpush3.bf16.msra.mxu1 %v4099_v38 }
 0x217   :  { %3677 = vmatprep.subr.bf16.mxu1 %v4100_v39 }
 0x21a   :  { %3678 = vmatpush3.bf16.msra.mxu1 %v4101_v40 }
 0x21b   :  { %3679 = vmatprep.subr.bf16.mxu1 %v4102_v41 }
 0x21e   :  { %3680 = vmatpush3.bf16.msra.mxu1 %v4103_v45  ;;  %v3165_v45 = vld [vmem:[%s4961_s4] ss:$0 sm:$0xff] }
 0x21f   :  { %3681 = vmatprep.subr.bf16.mxu1 %v4104_v48 }
 0x222   :  { %3682 = vmatpush3.bf16.msra.mxu1 %v4105_v52 }
 0x223   :  { %3695 = vmatprep.subr.bf16.mxu1 %v4106_v53 }
 0x225   :  { %2336 = vmatmul.mubr.bf16.vlgmr.msra.gmra.mrb[40].mxu1 %v2199_v61 }
 0x226   :  { %2342 = vmatprep.mubr.bf16.mxu1 %v2201_v30  ;;  %3696 = vmatpush3.bf16.msra.mxu1 %v4107_v34  ;;  %v2401_v30 = vor.u32 %v2400_v25, %v2397_v23  ;;  %v4123_v34 = vld [vmem:[%s4962_s5 + $0x8] sm:$0xff]  }
 0x227   :  { %3697 = vmatprep.subr.bf16.mxu1 %v4108_v60  ;;  %3755 = vmatprep.subr.bf16.mxu0 %v4123_v34 }
 0x228   :  { %v2410_v31 = vsel %vm2393_vm6, %v2401_v30, %v2409_v26  ;;  %3756 = vmatpush3.bf16.msra.mxu0 %v4123_v34 }
 0x22a   :  { %3698 = vmatpush3.bf16.msra.mxu1 %v4109_v62 }
 0x22b   :  { %3699 = vmatprep.subr.bf16.mxu1 %v4110_v63  ;;  %v4124_v63 = vld [vmem:[%s4962_s5 + $0x10] sm:$0xff]  }
 0x22c   :  { %3757 = vmatprep.subr.bf16.mxu0 %v4124_v63 }
 0x22d   :  { %2343 = vmatmul.mubr.bf16.gmra.mrb[44].mxu1 %v2198_v55  ;;  %3758 = vmatpush3.bf16.msra.mxu0 %v4124_v63 }
 0x22e   :  { %3700 = vmatpush3.bf16.msra.mxu1 %v4111_v3  ;;  %2560 = vmatprep.mubr.bf16.mxu1 %v2427_v5 }
 0x22f   :  { %3701 = vmatprep.subr.bf16.mxu1 %v4112_v4  ;;  %3759 = vmatprep.subr.bf16.mxu0 %v4125_v0 }
 0x231   :  { %3760 = vmatpush3.bf16.msra.mxu0 %v4125_v0 }
 0x232   :  { %3702 = vmatpush3.bf16.msra.mxu1 %v4113_v6 }
 0x233   :  { %3703 = vmatprep.subr.bf16.mxu1 %v4114_v7  ;;  %v4126_v7 = vld [vmem:[%s4962_s5 + $0x20] sm:$0xff]  }
 0x234   :  { %3761 = vmatprep.subr.bf16.mxu0 %v4126_v7 }
 0x235   :  { %3762 = vmatpush3.bf16.msra.mxu0 %v4126_v7  ;;  %v4133_v7 = vld [vmem:[%s4962_s5 + $0x58] sm:$0xff]  }
 0x236   :  { %3704 = vmatpush3.bf16.msra.mxu1 %v4115_v10  ;;  %3763 = vmatprep.subr.bf16.mxu0 %v4127_v8  ;;  %v4129_v10 = vld [vmem:[%s4962_s5 + $0x38] sm:$0xff]  }
 0x237   :  { %3705 = vmatprep.subr.bf16.mxu1 %v4116_v11  ;;  %v4897_v11 = vld [vmem:[%s4962_s5 + $0x40] sm:$0xff]  }
 0x239   :  { %3764 = vmatpush3.bf16.msra.mxu0 %v4127_v8  ;;  %v4134_v8 = vld [vmem:[%s4962_s5 + $0x60] sm:$0xff]  }
 0x23a   :  { %3706 = vmatpush3.bf16.msra.mxu1 %v4117_v15  ;;  %3765 = vmatprep.subr.bf16.mxu0 %v4128_v9 }
 0x23b   :  { %3707 = vmatprep.subr.bf16.mxu1 %v4118_v16 }
 0x23d   :  { %3766 = vmatpush3.bf16.msra.mxu0 %v4128_v9  ;;  %v4135_v9 = vld [vmem:[%s4962_s5 + $0x68] sm:$0xff]  }
 0x23e   :  { %3708 = vmatpush3.bf16.msra.mxu1 %v4119_v43  ;;  %3767 = vmatprep.subr.bf16.mxu0 %v4129_v10 }
 0x23f   :  { %3709 = vmatprep.subr.bf16.mxu1 %v4120_v32 }
 0x241   :  { %3768 = vmatpush3.bf16.msra.mxu0 %v4129_v10  ;;  %v4136_v10 = vld [vmem:[%s4962_s5 + $0x70] sm:$0xff]  }
 0x242   :  { %3710 = vmatpush3.bf16.msra.mxu1 %v4121_v29  ;;  %3773 = vmatprep.subr.bf16.mxu0 %v4897_v11 }
 0x245   :  { %2561 = vmatmul.mubr.bf16.vlgmr.msra.gmra.mrb[48].mxu1 %v2410_v31 }
 0x246   :  { %2567 = vmatprep.mubr.bf16.mxu1 %v2426_v2 }
 0x24d   :  { %2568 = vmatmul.mubr.bf16.gmra.mrb[52].mxu1 %v2409_v26 }
 0x258   :  { %v3543_v33 = vpop.f32.mrb[0].mxu1 }
 0x259   :  { %v3544_v35 = vpop.f32.mrb[1].mxu1 }
 0x25a   :  { %v3545_v36 = vadd.f32 %v3544_v35, %v3543_v33  ;;  %v3546_v37 = vpop.f32.mrb[2].mxu1 }
 0x25b   :  { %v3547_v38 = vpop.f32.mrb[3].mxu1 }
 0x25c   :  { %v1314_v48 = vadd.f32 %v3545_v36, %v3165_v45 }
 0x260   :  { %v3549_v39 = vpop.f32.mrb[4].mxu1 }
 0x261   :  { %v3550_v40 = vpop.f32.mrb[5].mxu1 }
 0x262   :  { %v3551_v41 = vadd.f32 %v3550_v40, %v3549_v39  ;;  %v3552_v42 = vpop.f32.mrb[6].mxu1 }
 0x263   :  { %v3553_v44 = vpop.f32.mrb[7].mxu1 }
 0x264   :  { %v1315_v54 = vadd.f32 %v3551_v41, %v3165_v45 }
 0x278   :  { %v3571_v46 = vpop.f32.mrb[8].mxu1 }
 0x279   :  { %v3572_v47 = vpop.f32.mrb[9].mxu1 }
 0x27a   :  { %v3573_v49 = vadd.f32 %v3572_v47, %v3571_v46  ;;  %v3574_v50 = vpop.f32.mrb[10].mxu1 }
 0x27b   :  { %v3575_v24 = vpop.f32.mrb[11].mxu1 }
 0x27c   :  { %v1515_v51 = vadd.f32 %v3573_v49, %v1314_v48 }
 0x280   :  { %v3577_v52 = vpop.f32.mrb[12].mxu1 }
 0x281   :  { %v3578_v53 = vpop.f32.mrb[13].mxu1 }
 0x282   :  { %v3579_v55 = vadd.f32 %v3578_v53, %v3577_v52  ;;  %v3580_v56 = vpop.f32.mrb[14].mxu1 }
 0x283   :  { %v3581_v57 = vpop.f32.mrb[15].mxu1 }
 0x284   :  { %v1516_v58 = vadd.f32 %v3579_v55, %v1315_v54 }
 0x298   :  { %v3599_v60 = vpop.f32.mrb[16].mxu1 }
 0x299   :  { %v3600_v61 = vpop.f32.mrb[17].mxu1 }
 0x29a   :  { %v3601_v14 = vadd.f32 %v3600_v61, %v3599_v60  ;;  %v3602_v1 = vpop.f32.mrb[18].mxu1 }
 0x29b   :  { %v3603_v18 = vpop.f32.mrb[19].mxu1 }
 0x29c   :  { %v1740_v19 = vadd.f32 %v3601_v14, %v1515_v51 }
 0x2a0   :  { %v3605_v62 = vpop.f32.mrb[20].mxu1 }
 0x2a1   :  { %v3606_v2 = vpop.f32.mrb[21].mxu1 }
 0x2a2   :  { %v3607_v3 = vadd.f32 %v3606_v2, %v3605_v62  ;;  %v3608_v4 = vpop.f32.mrb[22].mxu1 }
 0x2a3   :  { %v3609_v5 = vpop.f32.mrb[23].mxu1  ;;  %v4153_v4 = vld [vmem:[#allocation3] sm:$0xff] }
 0x2a4   :  { %v1741_v6 = vadd.f32 %v3607_v3, %v1516_v58  ;;  %v4131_v3 = vld [vmem:[%s4962_s5 + $0x48] sm:$0xff]  }
 0x2b8   :  { %v3627_v12 = vpop.f32.mrb[24].mxu1 }
 0x2b9   :  { %v3628_v13 = vpop.f32.mrb[25].mxu1 }
 0x2ba   :  { %v3629_v15 = vadd.f32 %v3628_v13, %v3627_v12  ;;  %v3630_v16 = vpop.f32.mrb[26].mxu1  ;;  %v4138_v12 = vld [vmem:[%s4962_s5 + $0x80] sm:$0xff]  }
 0x2bb   :  { %v3631_v17 = vpop.f32.mrb[27].mxu1 }
 0x2bc   :  { %v1924_v20 = vadd.f32 %v3629_v15, %v1740_v19  ;;  %v4139_v17 = vld [vmem:[%s4962_s5 + $0x88] sm:$0xff]  }
 0x2c0   :  { %v3633_v21 = vpop.f32.mrb[28].mxu1 }
 0x2c1   :  { %v3634_v22 = vpop.f32.mrb[29].mxu1 }
 0x2c2   :  { %v3635_v43 = vadd.f32 %v3634_v22, %v3633_v21  ;;  %v3636_v32 = vpop.f32.mrb[30].mxu1  ;;  %v4140_v21 = vld [vmem:[%s4962_s5 + $0x90] sm:$0xff]   ;;  %v4141_v22 = vld [vmem:[%s4962_s5 + $0x98] sm:$0xff]  }
 0x2c3   :  { %v3637_v23 = vpop.f32.mrb[31].mxu1  ;;  %v4143_v32 = vld [vmem:[%s4962_s5 + $0xa8] sm:$0xff]  }
 0x2c4   :  { %v1925_v25 = vadd.f32 %v3635_v43, %v1741_v6  ;;  %v4132_v6 = vld [vmem:[%s4962_s5 + $0x50] sm:$0xff]   ;;  %v4142_v43 = vld [vmem:[%s4962_s5 + $0xa0] sm:$0xff]  }
 0x2c5   :  { %v4144_v23 = vld [vmem:[%s4962_s5 + $0xb0] sm:$0xff]  }
 0x2d8   :  { %v3655_v27 = vpop.f32.mrb[32].mxu1 }
 0x2d9   :  { %v3656_v28 = vpop.f32.mrb[33].mxu1 }
 0x2da   :  { %v3657_v29 = vadd.f32 %v3656_v28, %v3655_v27  ;;  %v3658_v30 = vpop.f32.mrb[34].mxu1 }
 0x2db   :  { %v3659_v26 = vpop.f32.mrb[35].mxu1 }
 0x2dc   :  { %v2149_v31 = vadd.f32 %v3657_v29, %v1924_v20  ;;  %v3470_v29 = vld [vmem:[%s4963_s6] ss:$0 sm:$0xff] }
 0x2e0   :  { %v3661_v33 = vpop.f32.mrb[36].mxu1 }
 0x2e1   :  { %v3662_v35 = vpop.f32.mrb[37].mxu1 }
 0x2e2   :  { %v3663_v36 = vadd.f32 %v3662_v35, %v3661_v33  ;;  %v3664_v37 = vpop.f32.mrb[38].mxu1 }
 0x2e3   :  { %v3665_v38 = vpop.f32.mrb[39].mxu1 }
 0x2e4   :  { %v2150_v39 = vadd.f32 %v3663_v36, %v1925_v25  ;;  %v4145_v25 = vld [vmem:[%s4962_s5 + $0xb8] sm:$0xff]  }
 0x2f8   :  { %v3683_v40 = vpop.f32.mrb[40].mxu1 }
 0x2f9   :  { %v3684_v41 = vpop.f32.mrb[41].mxu1 }
 0x2fa   :  { %v3685_v42 = vadd.f32 %v3684_v41, %v3683_v40  ;;  %v3686_v44 = vpop.f32.mrb[42].mxu1 }
 0x2fb   :  { %v3687_v45 = vpop.f32.mrb[43].mxu1 }
 0x2fc   :  { %v2350_v46 = vadd.f32 %v3685_v42, %v2149_v31 }
 0x300   :  { %v3689_v47 = vpop.f32.mrb[44].mxu1 }
 0x301   :  { %v3690_v48 = vpop.f32.mrb[45].mxu1 }
 0x302   :  { %v3691_v49 = vadd.f32 %v3690_v48, %v3689_v47  ;;  %v3692_v50 = vpop.f32.mrb[46].mxu1 }
 0x303   :  { %v3693_v24 = vpop.f32.mrb[47].mxu1 }
 0x304   :  { %v2351_v51 = vadd.f32 %v3691_v49, %v2150_v39 }
 0x318   :  { %v3711_v52 = vpop.f32.mrb[48].mxu1 }
 0x319   :  { %v3712_v53 = vpop.f32.mrb[49].mxu1 }
 0x31a   :  { %v3713_v54 = vadd.f32 %v3712_v53, %v3711_v52  ;;  %v3714_v55 = vpop.f32.mrb[50].mxu1 }
 0x31b   :  { %v3715_v56 = vpop.f32.mrb[51].mxu1 }
 0x31c   :  { %v2575_v57 = vadd.f32 %v3713_v54, %v2350_v46 }
 0x31e   :  { %v2577_v58 = vmax.f32 %v2575_v57, 0.0 }
 0x320   :  { %2578 = vst [vmem:[#allocation4 + $0x8] sm:$0xff] %v2577_v58  ;;  %v3717_v59 = vpop.f32.mrb[52].mxu1  ;;  %v2709_v5 = vpack.c.bf16 %v4153_v4, %v2577_v58 }
 0x321   :  { %v3718_v34 = vpop.f32.mrb[53].mxu1 }
 0x322   :  { %v3719_v60 = vadd.f32 %v3718_v34, %v3717_v59  ;;  %v3720_v61 = vpop.f32.mrb[54].mxu1 }
 0x323   :  { %v3721_v14 = vpop.f32.mrb[55].mxu1 }
 0x324   :  { %v2576_v1 = vadd.f32 %v3719_v60, %v2351_v51 }
 0x326   :  { %v2579_v18 = vmax.f32 %v2576_v1, 0.0 }
 0x327   :  { %v2588_v19 = vld [vmem:[#allocation4 + $0x7] sm:$0xff]  ;;  %v2589_v62 = vld [vmem:[#allocation4 + $0xf] sm:$0xff] }
 0x328   :  { %2580 = vst [vmem:[#allocation4 + $0x18] sm:$0xff] %v2579_v18  ;;  %v2591_v63 = vpack.c.bf16 %v2589_v62, %v2588_v19  ;;  %v2710_v15 = vpack.c.bf16 %v2579_v18, %v2579_v18  ;;  %v2825_v16 = vld [vmem:[#allocation4 + $0x9] sm:$0xff] }
 0x32a   :  { %3769 = vmatprep.mubr.bf16.mxu0 %v2591_v63 }
 0x32f   :  { %v2590_v0 = vld [vmem:[#allocation4 + $0x17] sm:$0xff] }
 0x330   :  { %v2592_v2 = vpack.c.bf16 %v2590_v0, %v2590_v0  ;;  %v2826_v13 = vld [vmem:[#allocation4 + $0x11] sm:$0xff]  ;;  %v2827_v27 = vld [vmem:[#allocation4 + $0x19] sm:$0xff] }
 0x331   :  { %v2828_v20 = vpack.c.bf16 %v2826_v13, %v2825_v16  ;;  %v2829_v28 = vpack.c.bf16 %v2827_v27, %v2827_v27 }
 0x332   :  { %3770 = vmatmul.mubr.bf16.vlgmr.msra.gmra.mrb[8].mxu0 %v2592_v2 }
 0x333   :  { %3774 = vmatpush3.bf16.msra.mxu0 %v4897_v11  ;;  %3789 = vmatprep.mubr.bf16.mxu0 %v2709_v5  ;;  %v4137_v11 = vld [vmem:[%s4962_s5 + $0x78] sm:$0xff]  }
 0x334   :  { %3775 = vmatprep.subr.bf16.mxu0 %v4131_v3 }
 0x337   :  { %3776 = vmatpush3.bf16.msra.mxu0 %v4131_v3 }
 0x338   :  { %3777 = vmatprep.subr.bf16.mxu0 %v4132_v6 }
 0x33b   :  { %3778 = vmatpush3.bf16.msra.mxu0 %v4132_v6 }
 0x33c   :  { %3779 = vmatprep.subr.bf16.mxu0 %v4133_v7 }
 0x33f   :  { %3780 = vmatpush3.bf16.msra.mxu0 %v4133_v7 }
 0x340   :  { %3781 = vmatprep.subr.bf16.mxu0 %v4134_v8 }
 0x343   :  { %3782 = vmatpush3.bf16.msra.mxu0 %v4134_v8 }
 0x344   :  { %3783 = vmatprep.subr.bf16.mxu0 %v4135_v9 }
 0x347   :  { %3784 = vmatpush3.bf16.msra.mxu0 %v4135_v9 }
 0x348   :  { %3785 = vmatprep.subr.bf16.mxu0 %v4136_v10 }
 0x34b   :  { %3786 = vmatpush3.bf16.msra.mxu0 %v4136_v10 }
 0x34c   :  { %3787 = vmatprep.subr.bf16.mxu0 %v4137_v11 }
 0x34f   :  { %3788 = vmatpush3.bf16.msra.mxu0 %v4137_v11 }
 0x350   :  { %3793 = vmatprep.subr.bf16.mxu0 %v4138_v12 }
 0x352   :  { %3790 = vmatmul.mubr.bf16.vlgmr.msra.gmra.mrb[8].mxu0 %v2710_v15 }
 0x353   :  { %3794 = vmatpush3.bf16.msra.mxu0 %v4138_v12  ;;  %3809 = vmatprep.mubr.bf16.mxu0 %v2828_v20 }
 0x354   :  { %3795 = vmatprep.subr.bf16.mxu0 %v4139_v17 }
 0x357   :  { %3796 = vmatpush3.bf16.msra.mxu0 %v4139_v17 }
 0x358   :  { %3797 = vmatprep.subr.bf16.mxu0 %v4140_v21 }
 0x35b   :  { %3798 = vmatpush3.bf16.msra.mxu0 %v4140_v21 }
 0x35c   :  { %3799 = vmatprep.subr.bf16.mxu0 %v4141_v22 }
 0x35f   :  { %3800 = vmatpush3.bf16.msra.mxu0 %v4141_v22 }
 0x360   :  { %3801 = vmatprep.subr.bf16.mxu0 %v4142_v43 }
 0x363   :  { %3802 = vmatpush3.bf16.msra.mxu0 %v4142_v43 }
 0x364   :  { %3803 = vmatprep.subr.bf16.mxu0 %v4143_v32 }
 0x367   :  { %3804 = vmatpush3.bf16.msra.mxu0 %v4143_v32 }
 0x368   :  { %3805 = vmatprep.subr.bf16.mxu0 %v4144_v23 }
 0x36b   :  { %3806 = vmatpush3.bf16.msra.mxu0 %v4144_v23 }
 0x36c   :  { %3807 = vmatprep.subr.bf16.mxu0 %v4145_v25 }
 0x36f   :  { %3808 = vmatpush3.bf16.msra.mxu0 %v4145_v25 }
 0x372   :  { %3810 = vmatmul.mubr.bf16.vlgmr.msra.gmra.mrb[8].mxu0 %v2829_v28 }
 0x445   :  { %v3811_v30 = vpop.f32.mrb[8].mxu0 }
 0x446   :  { %v2929_v26 = vpop.f32.mrb[9].mxu0  ;;  %v3817_v31 = vadd.f32 %v3811_v30, %v3470_v29 }
 0x447   :  { %v3818_v33 = vadd.f32 %v3470_v29, %v2929_v26  ;;  %v3812_v35 = vpop.f32.mrb[10].mxu0 }
 0x448   :  { %v2932_v36 = vpop.f32.mrb[11].mxu0  ;;  %v2945_v38 = vmax.f32 %v3817_v31, 0.0 }
 0x449   :  { %v2944_v37 = vmax.f32 %v3818_v33, 0.0 }
 0x44a   :  { %v2957_v40 = vsel %vm27_vm0, %v2945_v38, -inf }
 0x44b   :  { %v2946_v39 = vsel %vm27_vm0, %v2944_v37, -inf }
 0x44c   :  { %2947 = vmax.xlane.f32.xlu0 %v2946_v39 }
 0x450   :  { %2958 = vmax.xlane.f32.xlu0 %v2957_v40 }
 0x4d9   :  { %v2948_v41 = vpop.xlane.xlu0 %2947 }
 0x4da   :  { %v2949_v42 = vrot.slane %v2948_v41, 4 }
 0x4dc   :  { %v2950_v44 = vmax.f32 %v2948_v41, %v2949_v42 }
 0x4dd   :  { %v2959_v45 = vpop.xlane.xlu0 %2958 }
 0x4de   :  { %v2951_v46 = vrot.slane %v2950_v44, 2  ;;  %v2960_v47 = vrot.slane %v2959_v45, 4 }
 0x4e0   :  { %v2961_v48 = vmax.f32 %v2959_v45, %v2960_v47  ;;  %v2952_v49 = vmax.f32 %v2950_v44, %v2951_v46 }
 0x4e2   :  { %v2962_v50 = vrot.slane %v2961_v48, 2  ;;  %v2953_v24 = vrot.slane %v2952_v49, 1 }
 0x4e4   :  { %v2954_v51 = vmax.f32 %v2952_v49, %v2953_v24  ;;  %v2963_v52 = vmax.f32 %v2961_v48, %v2962_v50 }
 0x4e6   :  { %3891 = vpush %v2954_v51  ;;  %v2964_v53 = vrot.slane %v2963_v52, 1 }
 0x4e8   :  { %v2965_v54 = vmax.f32 %v2963_v52, %v2964_v53 }
 0x4ea   :  { %3893 = vpush %v2965_v54 }
 0x517   :  { %s3892_s5 = spop %3891 }
 0x518   :  { %v2956_v55 = vstv %s3892_s5 }
 0x51b   :  { %s3894_s6 = spop %3893 }
 0x51c   :  { %v2967_v56 = vstv %s3894_s6 }
 0x51d   :  { %v2968_v57 = vmax.f32 %v2956_v55, %v2967_v56 }
 0x51f   :  { %v2969_v58 = vsub.f32 %v2944_v37, %v2968_v57  ;;  %v2972_v59 = vsub.f32 %v2945_v38, %v2968_v57 }
 0x521   :  { %v2970_v34 = vmul.f32 1.442695, %v2969_v58  ;;  %v2973_v60 = vmul.f32 1.442695, %v2972_v59 }
 0x523   :  { %4146 = vpow2.f32 %v2970_v34 }
 0x524   :  { %4148 = vpow2.f32 %v2973_v60 }
 0x52d   :  { %v4147_v61 = vpop.eup %4146 }
 0x52e   :  { %v4149_v14 = vpop.eup %4148  ;;  %v2975_v1 = vsel %vm27_vm0, %v4147_v61, 0.0 }
 0x52f   :  { %3000 = vrot.lane.b32.xlu0 %v4149_v14, %s4156_s18  ;;  %2976 = vadd.xlane.f32.xlu1 %v2975_v1  ;;  %v2986_v18 = vsel %vm27_vm0, %v4149_v14, 0.0 }
 0x533   :  { %2987 = vadd.xlane.f32.xlu1 %v2986_v18 }
 0x5a1   :  { %v3001_v16 = vpop.permute.xlu0 %3000 }
 0x5a2   :  { %v3003_v20 = vsel %vm27_vm0, %v4147_v61, %v3001_v16 }
 0x5bc   :  { %v2977_v19 = vpop.xlane.xlu1 %2976 }
 0x5bd   :  { %v2978_v62 = vrot.slane %v2977_v19, 4 }
 0x5bf   :  { %v2979_v63 = vadd.f32 %v2978_v62, %v2977_v19 }
 0x5c0   :  { %v2988_v0 = vpop.xlane.xlu1 %2987 }
 0x5c1   :  { %v2980_v2 = vrot.slane %v2979_v63, 2  ;;  %v2989_v3 = vrot.slane %v2988_v0, 4 }
 0x5c3   :  { %v2990_v4 = vadd.f32 %v2989_v3, %v2988_v0  ;;  %v2981_v5 = vadd.f32 %v2980_v2, %v2979_v63 }
 0x5c5   :  { %v2991_v6 = vrot.slane %v2990_v4, 2  ;;  %v2982_v7 = vrot.slane %v2981_v5, 1 }
 0x5c7   :  { %v2992_v8 = vadd.f32 %v2991_v6, %v2990_v4  ;;  %v2983_v9 = vadd.f32 %v2982_v7, %v2981_v5 }
 0x5c9   :  { %3895 = vpush %v2983_v9  ;;  %v2993_v10 = vrot.slane %v2992_v8, 1 }
 0x5cb   :  { %v2994_v11 = vadd.f32 %v2993_v10, %v2992_v8 }
 0x5cd   :  { %3897 = vpush %v2994_v11 }
 0x5fa   :  { %s3896_s19 = spop %3895 }
 0x5fb   :  { %v2985_v12 = vstv %s3896_s19 }
 0x5fe   :  { %s3898_s20 = spop %3897 }
 0x5ff   :  { %v2996_v13 = vstv %s3898_s20 }
 0x600   :  { %v2997_v15 = vadd.f32 %v2996_v13, %v2985_v12 }
 0x602   :  { %4150 = vrcp.f32 %v2997_v15 }
 0x60c   :  { %v4151_v17 = vpop.eup %4150 }
 0x60d   :  { %v3004_v21 = vmul.f32 %v4151_v17, %v3003_v20 }
 0x60f   :  { %3005 = vst [vmem:[%s4964_s7] sm:$0xff] %v3004_v21 }

</bundles_post_ra>
